<compile_context>
chip_gen: v6e
topology: v6e:2x2x1
jax: 0.10.0
libtpu: 0.0.40
codegen_flags: <defaults>
</compile_context>

<pallas_src>
import math
from functools import partial

import jax
import jax.numpy as jnp
from jax import lax
from jax.experimental import pallas as pl
from jax.experimental.pallas import tpu as pltpu

BN_EPS = 1e-5


def _round_up(x, m):
    return ((x + m - 1) // m) * m


# ----------------------------------------------------------------------------
# Static ASPP plan: which conv taps can ever touch a real pixel, shared pad,
# and the distinct flat-shift "views" of the padded image.
# ----------------------------------------------------------------------------
def _aspp_plan(H, W, rates):
    kept = []
    for d in rates:
        taps = []
        for kh in range(3):
            for kw in range(3):
                if kh == 1 and kw == 1:
                    continue
                # tap only ever samples zero padding -> drop (exact)
                if (kh != 1 and d >= H) or (kw != 1 and d >= W):
                    continue
                taps.append((kh, kw))
        kept.append(taps)
    dm = max([d for d, t in zip(rates, kept) if t], default=0)
    Wp = W + 2 * dm
    offsets = [0]                      # view 0 = center (shared by all branches)
    off_to_view = {0: 0}
    tap_view = {}
    for b, (d, taps) in enumerate(zip(rates, kept)):
        for (kh, kw) in taps:
            off = d * ((kh - 1) * Wp + (kw - 1))
            v = off_to_view.get(off)
            if v is None:
                v = len(offsets)
                off_to_view[off] = v
                offsets.append(off)
            tap_view[(b, kh, kw)] = v
    return dm, Wp, tuple(offsets), kept, tap_view


# ----------------------------------------------------------------------------
# Fused ASPP kernel (pad + all branches + projection; one image per grid step)
# ----------------------------------------------------------------------------
def _make_aspp_kernel(*, C, R, H, W, Wp, dm, Lp, Wwin, offsets):
    """Refs seen by the kernel:
      x_ref      : (1, C, H*W) f32   raw image (channel-major, flat spatial)
      wblk_ref   : ((1+R)*C, Vtot*C) bf16  block weight for ALL conv branches
      wprojc_ref : (C, (1+R)*C) bf16  projection over the conv-branch hiddens
      wpool_ref  : (C, C) bf16        pooling-branch 1x1 conv
      wprojp_ref : (C, C) bf16        projection columns for the pool branch
      bias_ref   : ((R+3)*C, 1) f32   [conv branches | pool | proj] BN biases
      o_ref      : (1, C, Lp) f32     column r = output at flat index h*Wp+w
      xpad_ref   : (C, F) f32         zero-padded, flattened image (scratch)
      xstk_ref   : (Vtot*C, Lp) bf16  stacked shifted views (scratch)
    """
    nbc = 1 + R
    c0 = dm * (Wp + 1)                 # flat index of output position (0, 0)
    inv_hw = 1.0 / float(H * W)

    def kernel(x_ref, wblk_ref, wprojc_ref, wpool_ref, wprojp_ref, bias_ref,
               o_ref, xpad_ref, xstk_ref):
        # ---- in-kernel zero-pad + flatten (no HBM padded-image round trip).
        #      memset every step: megacore-safe under "parallel" grid sharding.
        xpad_ref[...] = jnp.zeros_like(xpad_ref)
        for h in range(H):
            off = (h + dm) * Wp + dm
            xpad_ref[:, off:off + W] = x_ref[0, :, h * W:(h + 1) * W]

        # ---- stack every distinct shifted view (one per useful conv tap) ----
        for v, off in enumerate(offsets):
            start = c0 + off
            a = (start // 128) * 128                 # aligned VMEM window ...
            r = start - a
            win = xpad_ref[:, a:a + Wwin]            # (C, Wwin) f32
            xstk_ref[v * C:(v + 1) * C, :] = (
                win[:, r:r + Lp].astype(jnp.bfloat16))   # ... small lane shift

        # ---- ALL conv branches (1x1 + dilated 3x3, BN folded) in ONE matmul -
        m1 = jnp.dot(wblk_ref[...], xstk_ref[...],
                     preferred_element_type=jnp.float32)      # ((1+R)C, Lp)
        h_conv = jnp.maximum(m1 + bias_ref[0:nbc * C, :], 0.0
                             ).astype(jnp.bfloat16)

        # ---- pooling branch: global mean -> 1x1 matvec -> BN -> ReLU --------
        # (bilinear upsample of a 1x1 map == constant broadcast; padding
        #  columns of the center view are zero, so a plain lane-sum is exact.)
        pooled = jnp.sum(xstk_ref[0:C, :].astype(jnp.float32), axis=-1,
                         keepdims=True) * inv_hw              # (C, 1)
        pooled_bc = jnp.broadcast_to(pooled, (C, 128)).astype(jnp.bfloat16)
        hp = jnp.maximum(
            jnp.dot(wpool_ref[...], pooled_bc,
                    preferred_element_type=jnp.float32)
            + bias_ref[nbc * C:(nbc + 1) * C, :], 0.0)        # (C, 128)
        pv = jnp.dot(wprojp_ref[...], hp.astype(jnp.bfloat16),
                     preferred_element_type=jnp.float32)[:, 0:1]   # (C, 1)

        # ---- projection (+ folded BN bias) + ReLU; Dropout(0.5) is identity -
        out = jnp.dot(wprojc_ref[...], h_conv,
                      preferred_element_type=jnp.float32)     # (C, Lp)
        out = out + pv + bias_ref[(nbc + 1) * C:(nbc + 2) * C, :]
        o_ref[0] = jnp.maximum(out, 0.0).astype(o_ref.dtype)

    return kernel


# ----------------------------------------------------------------------------
# ASPP forward (wrapper: reshape in, un-flatten out; BN fold + weight packing)
# ----------------------------------------------------------------------------
@partial(jax.jit, static_argnames=("rates",))
def aspp_forward(x_nchw, weights, *, rates):
    """ASPP forward (inference). x_nchw: (N, C, H, W) f32 -> (N, C, H, W) f32."""
    N, C, H, W = x_nchw.shape
    R = len(rates)
    nbc = 1 + R
    dm, Wp, offsets, kept, tap_view = _aspp_plan(H, W, rates)
    Vtot = len(offsets)
    Lp = _round_up(H * Wp, 128)           # lane-dense output width (>= all pixels)
    Wwin = Lp + 128                       # aligned per-view load window
    F = _round_up(max((H + 2 * dm) * Wp, 2 * dm * (Wp + 1) + Wwin), 128)
    c_off0 = dm * (Wp + 1)
    del c_off0  # (kept for readability; the kernel recomputes it statically)

    # ---- fold inference BatchNorm into per-channel weight scale + bias ------
    def fold(w, g, b, m, v):
        s = g * lax.rsqrt(v + BN_EPS)
        return w * s.reshape((-1,) + (1,) * (w.ndim - 1)), b - m * s

    w1_f, b1 = fold(weights["w1"], *weights["bn1"])
    w3_f, b3 = [], []
    for i in range(R):
        wf, bf = fold(weights["w3"][i], *weights["bn3"][i])
        w3_f.append(wf)
        b3.append(bf)
    wpool_f, bpool = fold(weights["wpool"], *weights["bnpool"])
    wproj_f, bproj = fold(weights["wproj"], *weights["bnproj"])

    # ---- pack the block-structured conv weight ((1+R)C, Vtot*C) -------------
    wblk = jnp.zeros((nbc * C, Vtot * C), jnp.float32)
    wblk = wblk.at[0:C, 0:C].set(w1_f)                          # 1x1 @ center view
    for b in range(R):
        r0 = (1 + b) * C
        wblk = wblk.at[r0:r0 + C, 0:C].set(w3_f[b][:, :, 1, 1])  # center tap
        for (kh, kw) in kept[b]:
            v = tap_view[(b, kh, kw)]
            wblk = wblk.at[r0:r0 + C, v * C:(v + 1) * C].set(w3_f[b][:, :, kh, kw])
    wblk = wblk.astype(jnp.bfloat16)
    wprojc = wproj_f[:, :nbc * C].astype(jnp.bfloat16)
    wprojp = wproj_f[:, nbc * C:].astype(jnp.bfloat16)
    wpool_b = wpool_f.astype(jnp.bfloat16)
    bias = jnp.concatenate([b1] + b3 + [bpool, bproj]).reshape(-1, 1)
    bias = bias.astype(jnp.float32)

    x_flat = x_nchw.reshape(N, C, H * W)

    kernel = _make_aspp_kernel(C=C, R=R, H=H, W=W, Wp=Wp, dm=dm,
                               Lp=Lp, Wwin=Wwin, offsets=offsets)

    flops = 2 * N * (nbc * C * Vtot * C * Lp      # block conv matmul
                     + C * nbc * C * Lp           # projection
                     + 2 * C * C * 128)           # pool-branch matvecs
    bytes_accessed = (N * C * H * W * 4 + wblk.size * 2 + wprojc.size * 2
                      + wpool_b.size * 2 + wprojp.size * 2 + bias.size * 4
                      + N * C * Lp * 4)

    out_flat = pl.pallas_call(
        kernel,
        out_shape=jax.ShapeDtypeStruct((N, C, Lp), jnp.float32),
        grid_spec=pltpu.PrefetchScalarGridSpec(
            num_scalar_prefetch=0,
            grid=(N,),
            in_specs=[
                pl.BlockSpec((1, C, H * W), lambda n: (n, 0, 0)),        # image
                pl.BlockSpec((nbc * C, Vtot * C), lambda n: (0, 0)),     # block W
                pl.BlockSpec((C, nbc * C), lambda n: (0, 0)),            # proj (conv)
                pl.BlockSpec((C, C), lambda n: (0, 0)),                  # pool 1x1
                pl.BlockSpec((C, C), lambda n: (0, 0)),                  # proj (pool)
                pl.BlockSpec(((nbc + 2) * C, 1), lambda n: (0, 0)),      # BN biases
            ],
            out_specs=pl.BlockSpec((1, C, Lp), lambda n: (n, 0, 0)),
            scratch_shapes=[
                pltpu.VMEM((C, F), jnp.float32),          # padded flat image
                pltpu.VMEM((Vtot * C, Lp), jnp.bfloat16),  # stacked shifted views
            ],
        ),
        compiler_params=pltpu.CompilerParams(
            dimension_semantics=("parallel",),            # batch across TCs
            vmem_limit_bytes=32 * 1024 * 1024,
        ),
        cost_estimate=pl.CostEstimate(flops=flops, transcendentals=0,
                                      bytes_accessed=bytes_accessed),
    )(x_flat, wblk, wprojc, wpool_b, wprojp, bias)

    # Un-flatten: output column r corresponds to (h, w) with r = h*Wp + w.
    out = out_flat[:, :, :H * Wp].reshape(N, C, H, Wp)[:, :, :, :W]
    return out


# ----------------------------------------------------------------------------
# Pure-JAX f32 reference (same inference semantics) — used for validation only
# ----------------------------------------------------------------------------
def aspp_reference(x, weights, rates):
    def bn(y, g, b, m, v):
        s = g / jnp.sqrt(v + BN_EPS)
        return y * s[None, :, None, None] + (b - m * s)[None, :, None, None]

    N, C, H, W = x.shape
    res = [jax.nn.relu(bn(jnp.einsum("nchw,oc->nohw", x, weights["w1"]),
                          *weights["bn1"]))]
    for i, d in enumerate(rates):
        y = lax.conv_general_dilated(
            x, weights["w3"][i], window_strides=(1, 1),
            padding=((d, d), (d, d)), rhs_dilation=(d, d),
            dimension_numbers=("NCHW", "OIHW", "NCHW"))
        res.append(jax.nn.relu(bn(y, *weights["bn3"][i])))
    pooled = x.mean(axis=(2, 3), keepdims=True)
    y = jax.nn.relu(bn(jnp.einsum("nchw,oc->nohw", pooled, weights["wpool"]),
                       *weights["bnpool"]))
    res.append(jnp.broadcast_to(y, (N, C, H, W)))
    cat = jnp.concatenate(res, axis=1)
    y = jnp.einsum("nchw,oc->nohw", cat, weights["wproj"])
    return jax.nn.relu(bn(y, *weights["bnproj"]))


# ----------------------------------------------------------------------------
# Parameter construction (mirrors the PyTorch module's deterministic init)
# ----------------------------------------------------------------------------
def _xavier(key, shape, fan_in, fan_out):
    bound = math.sqrt(6.0 / (fan_in + fan_out))
    return jax.random.uniform(key, shape, jnp.float32, -bound, bound)


def _bn_identity(C):
    # (gamma, beta, running_mean, running_var) with the module's init
    return (jnp.ones((C,), jnp.float32), jnp.zeros((C,), jnp.float32),
            jnp.zeros((C,), jnp.float32), jnp.ones((C,), jnp.float32))


def make_aspp_params(key, C, rates):
    """ASPP(in=C, atrous_rates=rates, out=C) weights in torch layout."""
    R = len(rates)
    keys = jax.random.split(key, R + 3)
    weights = {
        "w1": _xavier(keys[0], (C, C, 1, 1), C, C)[:, :, 0, 0],
        "bn1": _bn_identity(C),
        "w3": tuple(_xavier(keys[1 + i], (C, C, 3, 3), 9 * C, 9 * C)
                    for i in range(R)),
        "bn3": tuple(_bn_identity(C) for _ in range(R)),
        "wpool": _xavier(keys[R + 1], (C, C, 1, 1), C, C)[:, :, 0, 0],
        "bnpool": _bn_identity(C),
        "wproj": _xavier(keys[R + 2], (C, (R + 2) * C, 1, 1),
                         (R + 2) * C, C)[:, :, 0, 0],
        "bnproj": _bn_identity(C),
    }
    return {"rates": tuple(int(r) for r in rates), "weights": weights}


def make_skip_module_params(key, in_channels, image_channel=4, if_aspp=True):
    out_channels = {"stage0": image_channel}
    for i in range(1, 6):
        out_channels[f"stage{i}"] = in_channels[f"stage{i}"]
    params = {"ifASPP": if_aspp, "outChannels": out_channels}
    if if_aspp:
        k5, k4, k3 = jax.random.split(key, 3)
        params["aspp5"] = make_aspp_params(k5, out_channels["stage5"], (3, 6, 9))
        params["aspp4"] = make_aspp_params(k4, out_channels["stage4"], (6, 12, 18))
        params["aspp3"] = make_aspp_params(k3, out_channels["stage3"], (12, 24, 36))
    return params


def skip_module_simple_forward(image, in_features, params):
    out = {}
    for i in range(1, 6):
        s = f"stage{i}"
        out[s] = in_features[s]
        if params["ifASPP"] and i >= 3:
            p = params[f"aspp{i}"]
            out[s] = aspp_forward(in_features[s], p["weights"], rates=p["rates"])
    out["stage0"] = image
    return out


# ----------------------------------------------------------------------------
if __name__ == "__main__":
    key = jax.random.PRNGKey(0)
    k_params, k_img, k1, k2, k3, k4, k5 = jax.random.split(key, 7)

    # small NCHW inputs (PyTorch convention)
    in_channels = {"stage1": 8, "stage2": 8, "stage3": 16, "stage4": 16, "stage5": 32}
    image = jax.random.normal(k_img, (2, 4, 16, 16), jnp.float32)
    in_features = {
        "stage1": jax.random.normal(k1, (2, 8, 16, 16), jnp.float32),
        "stage2": jax.random.normal(k2, (2, 8, 16, 16), jnp.float32),
        "stage3": jax.random.normal(k3, (2, 16, 16, 16), jnp.float32),
        "stage4": jax.random.normal(k4, (2, 16, 8, 8), jnp.float32),
        "stage5": jax.random.normal(k5, (2, 32, 8, 8), jnp.float32),
    }

    params = make_skip_module_params(k_params, in_channels,
                                     image_channel=4, if_aspp=True)

    out = skip_module_simple_forward(image, in_features, params)
    jax.block_until_ready(out)

    # shapes mirror the PyTorch module; ASPP outputs are ReLU'd and finite
    assert out["stage0"].shape == (2, 4, 16, 16)
    assert out["stage1"].shape == (2, 8, 16, 16)
    assert out["stage2"].shape == (2, 8, 16, 16)
    assert out["stage3"].shape == (2, 16, 16, 16)
    assert out["stage4"].shape == (2, 16, 8, 8)
    assert out["stage5"].shape == (2, 32, 8, 8)
    for i in (3, 4, 5):
        o = out[f"stage{i}"]
        assert bool(jnp.all(jnp.isfinite(o))) and bool(jnp.all(o >= 0))

    # numerical check against a pure-JAX f32 reference (bf16 matmul inputs in
    # the kernel -> allow a loose tolerance)
    for i in (3, 4, 5):
        p = params[f"aspp{i}"]
        ref = aspp_reference(in_features[f"stage{i}"], p["weights"], p["rates"])
        got = out[f"stage{i}"]
        err = float(jnp.max(jnp.abs(got - ref)))
        scale = float(jnp.max(jnp.abs(ref)))
        assert err <= 0.08 * scale + 0.08, (
            f"stage{i}: max abs err {err:.4f} vs scale {scale:.4f}")

    print("KERNEL_OK")
</pallas_src>

<mosaic_0001>
module attributes {stable_mosaic.version = 11 : i64} {
  func.func @kernel(%arg0: i32, %arg1: memref<1x16x256xf32, #tpu.memory_space<vmem>>, %arg2: memref<64x144xbf16, #tpu.memory_space<vmem>>, %arg3: memref<16x64xbf16, #tpu.memory_space<vmem>>, %arg4: memref<16x16xbf16, #tpu.memory_space<vmem>>, %arg5: memref<16x16xbf16, #tpu.memory_space<vmem>>, %arg6: memref<96x1xf32, #tpu.memory_space<vmem>>, %arg7: memref<1x16x640xf32, #tpu.memory_space<vmem>>, %arg8: memref<16x1792xf32, #tpu.memory_space<vmem>>, %arg9: memref<144x640xbf16, #tpu.memory_space<vmem>>) attributes {dimension_semantics = [#tpu.dimension_semantics<parallel>], iteration_bounds = array<i64: 2>, scalar_prefetch = 0 : i64, scratch_operands = 2 : i64, tpu.core_type = #tpu.core_type<tc>, window_params = [{transform_indices = @transform_0, window_bounds = array<i64: 1, 16, 256>}, {pipeline_mode = #tpu.pipeline_mode<synchronous>, transform_indices = @transform_1, window_bounds = array<i64: 64, 144>}, {pipeline_mode = #tpu.pipeline_mode<synchronous>, transform_indices = @transform_2, window_bounds = array<i64: 16, 64>}, {pipeline_mode = #tpu.pipeline_mode<synchronous>, transform_indices = @transform_3, window_bounds = array<i64: 16, 16>}, {pipeline_mode = #tpu.pipeline_mode<synchronous>, transform_indices = @transform_4, window_bounds = array<i64: 16, 16>}, {pipeline_mode = #tpu.pipeline_mode<synchronous>, transform_indices = @transform_5, window_bounds = array<i64: 96, 1>}, {transform_indices = @transform_6, window_bounds = array<i64: 1, 16, 640>}]} {
    %cst = arith.constant 0.000000e+00 : f32
    %0 = vector.broadcast %cst : f32 to vector<16x1792xf32>
    %c0 = arith.constant 0 : index
    %c0_0 = arith.constant 0 : index
    %1 = vector.load %arg8[%c0, %c0_0] : memref<16x1792xf32, #tpu.memory_space<vmem>>, vector<16x1792xf32>
    tpu.vector_store %arg8[%c0, %c0_0], %0 {strides = array<i32>} : memref<16x1792xf32, #tpu.memory_space<vmem>>, vector<16x1792xf32>,
    %c0_1 = arith.constant 0 : index
    %c0_2 = arith.constant 0 : index
    %c0_3 = arith.constant 0 : index
    %2 = vector.load %arg1[%c0_1, %c0_2, %c0_3] : memref<1x16x256xf32, #tpu.memory_space<vmem>>, vector<1x16x16xf32>
    %3 = vector.shape_cast %2 : vector<1x16x16xf32> to vector<16x16xf32>
    %c0_4 = arith.constant 0 : index
    %c492 = arith.constant 492 : index
    %4 = vector.load %arg8[%c0_4, %c492] : memref<16x1792xf32, #tpu.memory_space<vmem>>, vector<16x16xf32>
    tpu.vector_store %arg8[%c0_4, %c492], %3 {strides = array<i32>} : memref<16x1792xf32, #tpu.memory_space<vmem>>, vector<16x16xf32>,
    %c0_5 = arith.constant 0 : index
    %c0_6 = arith.constant 0 : index
    %c16 = arith.constant 16 : index
    %5 = vector.load %arg1[%c0_5, %c0_6, %c16] : memref<1x16x256xf32, #tpu.memory_space<vmem>>, vector<1x16x16xf32>
    %6 = vector.shape_cast %5 : vector<1x16x16xf32> to vector<16x16xf32>
    %c0_7 = arith.constant 0 : index
    %c532 = arith.constant 532 : index
    %7 = vector.load %arg8[%c0_7, %c532] : memref<16x1792xf32, #tpu.memory_space<vmem>>, vector<16x16xf32>
    tpu.vector_store %arg8[%c0_7, %c532], %6 {strides = array<i32>} : memref<16x1792xf32, #tpu.memory_space<vmem>>, vector<16x16xf32>,
    %c0_8 = arith.constant 0 : index
    %c0_9 = arith.constant 0 : index
    %c32 = arith.constant 32 : index
    %8 = vector.load %arg1[%c0_8, %c0_9, %c32] : memref<1x16x256xf32, #tpu.memory_space<vmem>>, vector<1x16x16xf32>
    %9 = vector.shape_cast %8 : vector<1x16x16xf32> to vector<16x16xf32>
    %c0_10 = arith.constant 0 : index
    %c572 = arith.constant 572 : index
    %10 = vector.load %arg8[%c0_10, %c572] : memref<16x1792xf32, #tpu.memory_space<vmem>>, vector<16x16xf32>
    tpu.vector_store %arg8[%c0_10, %c572], %9 {strides = array<i32>} : memref<16x1792xf32, #tpu.memory_space<vmem>>, vector<16x16xf32>,
    %c0_11 = arith.constant 0 : index
    %c0_12 = arith.constant 0 : index
    %c48 = arith.constant 48 : index
    %11 = vector.load %arg1[%c0_11, %c0_12, %c48] : memref<1x16x256xf32, #tpu.memory_space<vmem>>, vector<1x16x16xf32>
    %12 = vector.shape_cast %11 : vector<1x16x16xf32> to vector<16x16xf32>
    %c0_13 = arith.constant 0 : index
    %c612 = arith.constant 612 : index
    %13 = vector.load %arg8[%c0_13, %c612] : memref<16x1792xf32, #tpu.memory_space<vmem>>, vector<16x16xf32>
    tpu.vector_store %arg8[%c0_13, %c612], %12 {strides = array<i32>} : memref<16x1792xf32, #tpu.memory_space<vmem>>, vector<16x16xf32>,
    %c0_14 = arith.constant 0 : index
    %c0_15 = arith.constant 0 : index
    %c64 = arith.constant 64 : index
    %14 = vector.load %arg1[%c0_14, %c0_15, %c64] : memref<1x16x256xf32, #tpu.memory_space<vmem>>, vector<1x16x16xf32>
    %15 = vector.shape_cast %14 : vector<1x16x16xf32> to vector<16x16xf32>
    %c0_16 = arith.constant 0 : index
    %c652 = arith.constant 652 : index
    %16 = vector.load %arg8[%c0_16, %c652] : memref<16x1792xf32, #tpu.memory_space<vmem>>, vector<16x16xf32>
    tpu.vector_store %arg8[%c0_16, %c652], %15 {strides = array<i32>} : memref<16x1792xf32, #tpu.memory_space<vmem>>, vector<16x16xf32>,
    %c0_17 = arith.constant 0 : index
    %c0_18 = arith.constant 0 : index
    %c80 = arith.constant 80 : index
    %17 = vector.load %arg1[%c0_17, %c0_18, %c80] : memref<1x16x256xf32, #tpu.memory_space<vmem>>, vector<1x16x16xf32>
    %18 = vector.shape_cast %17 : vector<1x16x16xf32> to vector<16x16xf32>
    %c0_19 = arith.constant 0 : index
    %c692 = arith.constant 692 : index
    %19 = vector.load %arg8[%c0_19, %c692] : memref<16x1792xf32, #tpu.memory_space<vmem>>, vector<16x16xf32>
    tpu.vector_store %arg8[%c0_19, %c692], %18 {strides = array<i32>} : memref<16x1792xf32, #tpu.memory_space<vmem>>, vector<16x16xf32>,
    %c0_20 = arith.constant 0 : index
    %c0_21 = arith.constant 0 : index
    %c96 = arith.constant 96 : index
    %20 = vector.load %arg1[%c0_20, %c0_21, %c96] : memref<1x16x256xf32, #tpu.memory_space<vmem>>, vector<1x16x16xf32>
    %21 = vector.shape_cast %20 : vector<1x16x16xf32> to vector<16x16xf32>
    %c0_22 = arith.constant 0 : index
    %c732 = arith.constant 732 : index
    %22 = vector.load %arg8[%c0_22, %c732] : memref<16x1792xf32, #tpu.memory_space<vmem>>, vector<16x16xf32>
    tpu.vector_store %arg8[%c0_22, %c732], %21 {strides = array<i32>} : memref<16x1792xf32, #tpu.memory_space<vmem>>, vector<16x16xf32>,
    %c0_23 = arith.constant 0 : index
    %c0_24 = arith.constant 0 : index
    %c112 = arith.constant 112 : index
    %23 = vector.load %arg1[%c0_23, %c0_24, %c112] : memref<1x16x256xf32, #tpu.memory_space<vmem>>, vector<1x16x16xf32>
    %24 = vector.shape_cast %23 : vector<1x16x16xf32> to vector<16x16xf32>
    %c0_25 = arith.constant 0 : index
    %c772 = arith.constant 772 : index
    %25 = vector.load %arg8[%c0_25, %c772] : memref<16x1792xf32, #tpu.memory_space<vmem>>, vector<16x16xf32>
    tpu.vector_store %arg8[%c0_25, %c772], %24 {strides = array<i32>} : memref<16x1792xf32, #tpu.memory_space<vmem>>, vector<16x16xf32>,
    %c0_26 = arith.constant 0 : index
    %c0_27 = arith.constant 0 : index
    %c128 = arith.constant 128 : index
    %26 = vector.load %arg1[%c0_26, %c0_27, %c128] : memref<1x16x256xf32, #tpu.memory_space<vmem>>, vector<1x16x16xf32>
    %27 = vector.shape_cast %26 : vector<1x16x16xf32> to vector<16x16xf32>
    %c0_28 = arith.constant 0 : index
    %c812 = arith.constant 812 : index
    %28 = vector.load %arg8[%c0_28, %c812] : memref<16x1792xf32, #tpu.memory_space<vmem>>, vector<16x16xf32>
    tpu.vector_store %arg8[%c0_28, %c812], %27 {strides = array<i32>} : memref<16x1792xf32, #tpu.memory_space<vmem>>, vector<16x16xf32>,
    %c0_29 = arith.constant 0 : index
    %c0_30 = arith.constant 0 : index
    %c144 = arith.constant 144 : index
    %29 = vector.load %arg1[%c0_29, %c0_30, %c144] : memref<1x16x256xf32, #tpu.memory_space<vmem>>, vector<1x16x16xf32>
    %30 = vector.shape_cast %29 : vector<1x16x16xf32> to vector<16x16xf32>
    %c0_31 = arith.constant 0 : index
    %c852 = arith.constant 852 : index
    %31 = vector.load %arg8[%c0_31, %c852] : memref<16x1792xf32, #tpu.memory_space<vmem>>, vector<16x16xf32>
    tpu.vector_store %arg8[%c0_31, %c852], %30 {strides = array<i32>} : memref<16x1792xf32, #tpu.memory_space<vmem>>, vector<16x16xf32>,
    %c0_32 = arith.constant 0 : index
    %c0_33 = arith.constant 0 : index
    %c160 = arith.constant 160 : index
    %32 = vector.load %arg1[%c0_32, %c0_33, %c160] : memref<1x16x256xf32, #tpu.memory_space<vmem>>, vector<1x16x16xf32>
    %33 = vector.shape_cast %32 : vector<1x16x16xf32> to vector<16x16xf32>
    %c0_34 = arith.constant 0 : index
    %c892 = arith.constant 892 : index
    %34 = vector.load %arg8[%c0_34, %c892] : memref<16x1792xf32, #tpu.memory_space<vmem>>, vector<16x16xf32>
    tpu.vector_store %arg8[%c0_34, %c892], %33 {strides = array<i32>} : memref<16x1792xf32, #tpu.memory_space<vmem>>, vector<16x16xf32>,
    %c0_35 = arith.constant 0 : index
    %c0_36 = arith.constant 0 : index
    %c176 = arith.constant 176 : index
    %35 = vector.load %arg1[%c0_35, %c0_36, %c176] : memref<1x16x256xf32, #tpu.memory_space<vmem>>, vector<1x16x16xf32>
    %36 = vector.shape_cast %35 : vector<1x16x16xf32> to vector<16x16xf32>
    %c0_37 = arith.constant 0 : index
    %c932 = arith.constant 932 : index
    %37 = vector.load %arg8[%c0_37, %c932] : memref<16x1792xf32, #tpu.memory_space<vmem>>, vector<16x16xf32>
    tpu.vector_store %arg8[%c0_37, %c932], %36 {strides = array<i32>} : memref<16x1792xf32, #tpu.memory_space<vmem>>, vector<16x16xf32>,
    %c0_38 = arith.constant 0 : index
    %c0_39 = arith.constant 0 : index
    %c192 = arith.constant 192 : index
    %38 = vector.load %arg1[%c0_38, %c0_39, %c192] : memref<1x16x256xf32, #tpu.memory_space<vmem>>, vector<1x16x16xf32>
    %39 = vector.shape_cast %38 : vector<1x16x16xf32> to vector<16x16xf32>
    %c0_40 = arith.constant 0 : index
    %c972 = arith.constant 972 : index
    %40 = vector.load %arg8[%c0_40, %c972] : memref<16x1792xf32, #tpu.memory_space<vmem>>, vector<16x16xf32>
    tpu.vector_store %arg8[%c0_40, %c972], %39 {strides = array<i32>} : memref<16x1792xf32, #tpu.memory_space<vmem>>, vector<16x16xf32>,
    %c0_41 = arith.constant 0 : index
    %c0_42 = arith.constant 0 : index
    %c208 = arith.constant 208 : index
    %41 = vector.load %arg1[%c0_41, %c0_42, %c208] : memref<1x16x256xf32, #tpu.memory_space<vmem>>, vector<1x16x16xf32>
    %42 = vector.shape_cast %41 : vector<1x16x16xf32> to vector<16x16xf32>
    %c0_43 = arith.constant 0 : index
    %c1012 = arith.constant 1012 : index
    %43 = vector.load %arg8[%c0_43, %c1012] : memref<16x1792xf32, #tpu.memory_space<vmem>>, vector<16x16xf32>
    tpu.vector_store %arg8[%c0_43, %c1012], %42 {strides = array<i32>} : memref<16x1792xf32, #tpu.memory_space<vmem>>, vector<16x16xf32>,
    %c0_44 = arith.constant 0 : index
    %c0_45 = arith.constant 0 : index
    %c224 = arith.constant 224 : index
    %44 = vector.load %arg1[%c0_44, %c0_45, %c224] : memref<1x16x256xf32, #tpu.memory_space<vmem>>, vector<1x16x16xf32>
    %45 = vector.shape_cast %44 : vector<1x16x16xf32> to vector<16x16xf32>
    %c0_46 = arith.constant 0 : index
    %c1052 = arith.constant 1052 : index
    %46 = vector.load %arg8[%c0_46, %c1052] : memref<16x1792xf32, #tpu.memory_space<vmem>>, vector<16x16xf32>
    tpu.vector_store %arg8[%c0_46, %c1052], %45 {strides = array<i32>} : memref<16x1792xf32, #tpu.memory_space<vmem>>, vector<16x16xf32>,
    %c0_47 = arith.constant 0 : index
    %c0_48 = arith.constant 0 : index
    %c240 = arith.constant 240 : index
    %47 = vector.load %arg1[%c0_47, %c0_48, %c240] : memref<1x16x256xf32, #tpu.memory_space<vmem>>, vector<1x16x16xf32>
    %48 = vector.shape_cast %47 : vector<1x16x16xf32> to vector<16x16xf32>
    %c0_49 = arith.constant 0 : index
    %c1092 = arith.constant 1092 : index
    %49 = vector.load %arg8[%c0_49, %c1092] : memref<16x1792xf32, #tpu.memory_space<vmem>>, vector<16x16xf32>
    tpu.vector_store %arg8[%c0_49, %c1092], %48 {strides = array<i32>} : memref<16x1792xf32, #tpu.memory_space<vmem>>, vector<16x16xf32>,
    %c0_50 = arith.constant 0 : index
    %c384 = arith.constant 384 : index
    %50 = vector.load %arg8[%c0_50, %c384] : memref<16x1792xf32, #tpu.memory_space<vmem>>, vector<16x768xf32>
    %51 = vector.extract_strided_slice %50 {offsets = [0, 108], sizes = [16, 640], strides = [1, 1]} : vector<16x768xf32> to vector<16x640xf32>
    %52 = arith.truncf %51 : vector<16x640xf32> to vector<16x640xbf16>
    %c0_51 = arith.constant 0 : index
    %c0_52 = arith.constant 0 : index
    %53 = vector.load %arg9[%c0_51, %c0_52] : memref<144x640xbf16, #tpu.memory_space<vmem>>, vector<16x640xbf16>
    tpu.vector_store %arg9[%c0_51, %c0_52], %52 {strides = array<i32>} : memref<144x640xbf16, #tpu.memory_space<vmem>>, vector<16x640xbf16>,
    %c0_53 = arith.constant 0 : index
    %c0_54 = arith.constant 0 : index
    %54 = vector.load %arg8[%c0_53, %c0_54] : memref<16x1792xf32, #tpu.memory_space<vmem>>, vector<16x768xf32>
    %55 = vector.extract_strided_slice %54 {offsets = [0, 0], sizes = [16, 640], strides = [1, 1]} : vector<16x768xf32> to vector<16x640xf32>
    %56 = arith.truncf %55 : vector<16x640xf32> to vector<16x640xbf16>
    %c16_55 = arith.constant 16 : index
    %c0_56 = arith.constant 0 : index
    %57 = vector.load %arg9[%c16_55, %c0_56] : memref<144x640xbf16, #tpu.memory_space<vmem>>, vector<16x640xbf16>
    tpu.vector_store %arg9[%c16_55, %c0_56], %56 {strides = array<i32>} : memref<144x640xbf16, #tpu.memory_space<vmem>>, vector<16x640xbf16>,
    %c0_57 = arith.constant 0 : index
    %c0_58 = arith.constant 0 : index
    %58 = vector.load %arg8[%c0_57, %c0_58] : memref<16x1792xf32, #tpu.memory_space<vmem>>, vector<16x768xf32>
    %59 = vector.extract_strided_slice %58 {offsets = [0, 12], sizes = [16, 640], strides = [1, 1]} : vector<16x768xf32> to vector<16x640xf32>
    %60 = arith.truncf %59 : vector<16x640xf32> to vector<16x640xbf16>
    %c32_59 = arith.constant 32 : index
    %c0_60 = arith.constant 0 : index
    %61 = vector.load %arg9[%c32_59, %c0_60] : memref<144x640xbf16, #tpu.memory_space<vmem>>, vector<16x640xbf16>
    tpu.vector_store %arg9[%c32_59, %c0_60], %60 {strides = array<i32>} : memref<144x640xbf16, #tpu.memory_space<vmem>>, vector<16x640xbf16>,
    %c0_61 = arith.constant 0 : index
    %c0_62 = arith.constant 0 : index
    %62 = vector.load %arg8[%c0_61, %c0_62] : memref<16x1792xf32, #tpu.memory_space<vmem>>, vector<16x768xf32>
    %63 = vector.extract_strided_slice %62 {offsets = [0, 24], sizes = [16, 640], strides = [1, 1]} : vector<16x768xf32> to vector<16x640xf32>
    %64 = arith.truncf %63 : vector<16x640xf32> to vector<16x640xbf16>
    %c48_63 = arith.constant 48 : index
    %c0_64 = arith.constant 0 : index
    %65 = vector.load %arg9[%c48_63, %c0_64] : memref<144x640xbf16, #tpu.memory_space<vmem>>, vector<16x640xbf16>
    tpu.vector_store %arg9[%c48_63, %c0_64], %64 {strides = array<i32>} : memref<144x640xbf16, #tpu.memory_space<vmem>>, vector<16x640xbf16>,
    %c0_65 = arith.constant 0 : index
    %c384_66 = arith.constant 384 : index
    %66 = vector.load %arg8[%c0_65, %c384_66] : memref<16x1792xf32, #tpu.memory_space<vmem>>, vector<16x768xf32>
    %67 = vector.extract_strided_slice %66 {offsets = [0, 96], sizes = [16, 640], strides = [1, 1]} : vector<16x768xf32> to vector<16x640xf32>
    %68 = arith.truncf %67 : vector<16x640xf32> to vector<16x640xbf16>
    %c64_67 = arith.constant 64 : index
    %c0_68 = arith.constant 0 : index
    %69 = vector.load %arg9[%c64_67, %c0_68] : memref<144x640xbf16, #tpu.memory_space<vmem>>, vector<16x640xbf16>
    tpu.vector_store %arg9[%c64_67, %c0_68], %68 {strides = array<i32>} : memref<144x640xbf16, #tpu.memory_space<vmem>>, vector<16x640xbf16>,
    %c0_69 = arith.constant 0 : index
    %c384_70 = arith.constant 384 : index
    %70 = vector.load %arg8[%c0_69, %c384_70] : memref<16x1792xf32, #tpu.memory_space<vmem>>, vector<16x768xf32>
    %71 = vector.extract_strided_slice %70 {offsets = [0, 120], sizes = [16, 640], strides = [1, 1]} : vector<16x768xf32> to vector<16x640xf32>
    %72 = arith.truncf %71 : vector<16x640xf32> to vector<16x640xbf16>
    %c80_71 = arith.constant 80 : index
    %c0_72 = arith.constant 0 : index
    %73 = vector.load %arg9[%c80_71, %c0_72] : memref<144x640xbf16, #tpu.memory_space<vmem>>, vector<16x640xbf16>
    tpu.vector_store %arg9[%c80_71, %c0_72], %72 {strides = array<i32>} : memref<144x640xbf16, #tpu.memory_space<vmem>>, vector<16x640xbf16>,
    %c0_73 = arith.constant 0 : index
    %c896 = arith.constant 896 : index
    %74 = vector.load %arg8[%c0_73, %c896] : memref<16x1792xf32, #tpu.memory_space<vmem>>, vector<16x768xf32>
    %75 = vector.extract_strided_slice %74 {offsets = [0, 64], sizes = [16, 640], strides = [1, 1]} : vector<16x768xf32> to vector<16x640xf32>
    %76 = arith.truncf %75 : vector<16x640xf32> to vector<16x640xbf16>
    %c96_74 = arith.constant 96 : index
    %c0_75 = arith.constant 0 : index
    %77 = vector.load %arg9[%c96_74, %c0_75] : memref<144x640xbf16, #tpu.memory_space<vmem>>, vector<16x640xbf16>
    tpu.vector_store %arg9[%c96_74, %c0_75], %76 {strides = array<i32>} : memref<144x640xbf16, #tpu.memory_space<vmem>>, vector<16x640xbf16>,
    %c0_76 = arith.constant 0 : index
    %c896_77 = arith.constant 896 : index
    %78 = vector.load %arg8[%c0_76, %c896_77] : memref<16x1792xf32, #tpu.memory_space<vmem>>, vector<16x768xf32>
    %79 = vector.extract_strided_slice %78 {offsets = [0, 76], sizes = [16, 640], strides = [1, 1]} : vector<16x768xf32> to vector<16x640xf32>
    %80 = arith.truncf %79 : vector<16x640xf32> to vector<16x640xbf16>
    %c112_78 = arith.constant 112 : index
    %c0_79 = arith.constant 0 : index
    %81 = vector.load %arg9[%c112_78, %c0_79] : memref<144x640xbf16, #tpu.memory_space<vmem>>, vector<16x640xbf16>
    tpu.vector_store %arg9[%c112_78, %c0_79], %80 {strides = array<i32>} : memref<144x640xbf16, #tpu.memory_space<vmem>>, vector<16x640xbf16>,
    %c0_80 = arith.constant 0 : index
    %c896_81 = arith.constant 896 : index
    %82 = vector.load %arg8[%c0_80, %c896_81] : memref<16x1792xf32, #tpu.memory_space<vmem>>, vector<16x768xf32>
    %83 = vector.extract_strided_slice %82 {offsets = [0, 88], sizes = [16, 640], strides = [1, 1]} : vector<16x768xf32> to vector<16x640xf32>
    %84 = arith.truncf %83 : vector<16x640xf32> to vector<16x640xbf16>
    %c128_82 = arith.constant 128 : index
    %c0_83 = arith.constant 0 : index
    %85 = vector.load %arg9[%c128_82, %c0_83] : memref<144x640xbf16, #tpu.memory_space<vmem>>, vector<16x640xbf16>
    tpu.vector_store %arg9[%c128_82, %c0_83], %84 {strides = array<i32>} : memref<144x640xbf16, #tpu.memory_space<vmem>>, vector<16x640xbf16>,
    %c0_84 = arith.constant 0 : index
    %c0_85 = arith.constant 0 : index
    %86 = vector.load %arg2[%c0_84, %c0_85] : memref<64x144xbf16, #tpu.memory_space<vmem>>, vector<64x144xbf16>
    %c0_86 = arith.constant 0 : index
    %c0_87 = arith.constant 0 : index
    %87 = vector.load %arg9[%c0_86, %c0_87] : memref<144x640xbf16, #tpu.memory_space<vmem>>, vector<144x640xbf16>
    %cst_88 = arith.constant dense<0.000000e+00> : vector<64x640xf32>
    %88 = tpu.matmul %86, %87, %cst_88 {dimension_numbers = #tpu.dot_dimension_numbers<[1], [0], [0], [1], [0, 0, 1, 1], [], []>} : vector<64x144xbf16>, vector<144x640xbf16>, vector<64x640xf32> -> vector<64x640xf32>
    %c0_89 = arith.constant 0 : index
    %c0_90 = arith.constant 0 : index
    %89 = vector.load %arg6[%c0_89, %c0_90] : memref<96x1xf32, #tpu.memory_space<vmem>>, vector<64x1xf32>
    %90 = vector.broadcast %89 : vector<64x1xf32> to vector<64x640xf32>
    %91 = arith.addf %88, %90 : vector<64x640xf32>
    %cst_91 = arith.constant 0.000000e+00 : f32
    %92 = vector.broadcast %cst_91 : f32 to vector<64x640xf32>
    %93 = arith.maximumf %91, %92 : vector<64x640xf32>
    %94 = arith.truncf %93 : vector<64x640xf32> to vector<64x640xbf16>
    %c0_92 = arith.constant 0 : index
    %c0_93 = arith.constant 0 : index
    %95 = vector.load %arg9[%c0_92, %c0_93] : memref<144x640xbf16, #tpu.memory_space<vmem>>, vector<16x640xbf16>
    %96 = arith.extf %95 : vector<16x640xbf16> to vector<16x640xf32>
    %cst_94 = arith.constant dense<0.000000e+00> : vector<16xf32>
    %97 = vector.multi_reduction <add>, %96, %cst_94 [1] : vector<16x640xf32> to vector<16xf32>
    %98 = vector.shape_cast %97 : vector<16xf32> to vector<16x1xf32>
    %cst_95 = arith.constant 3.906250e-03 : f32
    %99 = vector.broadcast %cst_95 : f32 to vector<16x1xf32>
    %100 = arith.mulf %98, %99 : vector<16x1xf32>
    %101 = vector.shape_cast %100 : vector<16x1xf32> to vector<16x1xf32>
    %102 = vector.broadcast %101 : vector<16x1xf32> to vector<16x128xf32>
    %103 = arith.truncf %102 : vector<16x128xf32> to vector<16x128xbf16>
    %c0_96 = arith.constant 0 : index
    %c0_97 = arith.constant 0 : index
    %104 = vector.load %arg4[%c0_96, %c0_97] : memref<16x16xbf16, #tpu.memory_space<vmem>>, vector<16x16xbf16>
    %cst_98 = arith.constant dense<0.000000e+00> : vector<16x128xf32>
    %105 = tpu.matmul %104, %103, %cst_98 {dimension_numbers = #tpu.dot_dimension_numbers<[1], [0], [0], [1], [0, 0, 1, 1], [], []>} : vector<16x16xbf16>, vector<16x128xbf16>, vector<16x128xf32> -> vector<16x128xf32>
    %c64_99 = arith.constant 64 : index
    %c0_100 = arith.constant 0 : index
    %106 = vector.load %arg6[%c64_99, %c0_100] : memref<96x1xf32, #tpu.memory_space<vmem>>, vector<16x1xf32>
    %107 = vector.broadcast %106 : vector<16x1xf32> to vector<16x128xf32>
    %108 = arith.addf %105, %107 : vector<16x128xf32>
    %cst_101 = arith.constant 0.000000e+00 : f32
    %109 = vector.broadcast %cst_101 : f32 to vector<16x128xf32>
    %110 = arith.maximumf %108, %109 : vector<16x128xf32>
    %c0_102 = arith.constant 0 : index
    %c0_103 = arith.constant 0 : index
    %111 = vector.load %arg5[%c0_102, %c0_103] : memref<16x16xbf16, #tpu.memory_space<vmem>>, vector<16x16xbf16>
    %112 = arith.truncf %110 : vector<16x128xf32> to vector<16x128xbf16>
    %cst_104 = arith.constant dense<0.000000e+00> : vector<16x128xf32>
    %113 = tpu.matmul %111, %112, %cst_104 {dimension_numbers = #tpu.dot_dimension_numbers<[1], [0], [0], [1], [0, 0, 1, 1], [], []>} : vector<16x16xbf16>, vector<16x128xbf16>, vector<16x128xf32> -> vector<16x128xf32>
    %114 = vector.extract_strided_slice %113 {offsets = [0, 0], sizes = [16, 1], strides = [1, 1]} : vector<16x128xf32> to vector<16x1xf32>
    %c0_105 = arith.constant 0 : index
    %c0_106 = arith.constant 0 : index
    %115 = vector.load %arg3[%c0_105, %c0_106] : memref<16x64xbf16, #tpu.memory_space<vmem>>, vector<16x64xbf16>
    %cst_107 = arith.constant dense<0.000000e+00> : vector<16x640xf32>
    %116 = tpu.matmul %115, %94, %cst_107 {dimension_numbers = #tpu.dot_dimension_numbers<[1], [0], [0], [1], [0, 0, 1, 1], [], []>} : vector<16x64xbf16>, vector<64x640xbf16>, vector<16x640xf32> -> vector<16x640xf32>
    %117 = vector.broadcast %114 : vector<16x1xf32> to vector<16x640xf32>
    %118 = arith.addf %116, %117 : vector<16x640xf32>
    %c80_108 = arith.constant 80 : index
    %c0_109 = arith.constant 0 : index
    %119 = vector.load %arg6[%c80_108, %c0_109] : memref<96x1xf32, #tpu.memory_space<vmem>>, vector<16x1xf32>
    %120 = vector.broadcast %119 : vector<16x1xf32> to vector<16x640xf32>
    %121 = arith.addf %118, %120 : vector<16x640xf32>
    %cst_110 = arith.constant 0.000000e+00 : f32
    %122 = vector.broadcast %cst_110 : f32 to vector<16x640xf32>
    %123 = arith.maximumf %121, %122 : vector<16x640xf32>
    %c0_111 = arith.constant 0 : index
    %c0_112 = arith.constant 0 : index
    %c0_113 = arith.constant 0 : index
    %124 = vector.load %arg7[%c0_111, %c0_112, %c0_113] : memref<1x16x640xf32, #tpu.memory_space<vmem>>, vector<1x16x640xf32>
    %125 = vector.shape_cast %124 : vector<1x16x640xf32> to vector<16x640xf32>
    %126 = vector.shape_cast %123 : vector<16x640xf32> to vector<1x16x640xf32>
    tpu.vector_store %arg7[%c0_111, %c0_112, %c0_113], %126 {strides = array<i32>} : memref<1x16x640xf32, #tpu.memory_space<vmem>>, vector<1x16x640xf32>,
    return
  }
  func.func @transform_0(%arg0: i32) -> (i32, i32, i32) {
    %c0_i32 = arith.constant 0 : i32
    %c0_i32_0 = arith.constant 0 : i32
    %c0_i32_1 = arith.constant 0 : i32
    return %arg0, %c0_i32, %c0_i32_0 : i32, i32, i32
  }
  func.func @transform_1(%arg0: i32) -> (i32, i32) {
    %c0_i32 = arith.constant 0 : i32
    %c0_i32_0 = arith.constant 0 : i32
    %c0_i32_1 = arith.constant 0 : i32
    return %c0_i32, %c0_i32_0 : i32, i32
  }
  func.func @transform_2(%arg0: i32) -> (i32, i32) {
    %c0_i32 = arith.constant 0 : i32
    %c0_i32_0 = arith.constant 0 : i32
    %c0_i32_1 = arith.constant 0 : i32
    return %c0_i32, %c0_i32_0 : i32, i32
  }
  func.func @transform_3(%arg0: i32) -> (i32, i32) {
    %c0_i32 = arith.constant 0 : i32
    %c0_i32_0 = arith.constant 0 : i32
    %c0_i32_1 = arith.constant 0 : i32
    return %c0_i32, %c0_i32_0 : i32, i32
  }
  func.func @transform_4(%arg0: i32) -> (i32, i32) {
    %c0_i32 = arith.constant 0 : i32
    %c0_i32_0 = arith.constant 0 : i32
    %c0_i32_1 = arith.constant 0 : i32
    return %c0_i32, %c0_i32_0 : i32, i32
  }
  func.func @transform_5(%arg0: i32) -> (i32, i32) {
    %c0_i32 = arith.constant 0 : i32
    %c0_i32_0 = arith.constant 0 : i32
    %c0_i32_1 = arith.constant 0 : i32
    return %c0_i32, %c0_i32_0 : i32, i32
  }
  func.func @transform_6(%arg0: i32) -> (i32, i32, i32) {
    %c0_i32 = arith.constant 0 : i32
    %c0_i32_0 = arith.constant 0 : i32
    %c0_i32_1 = arith.constant 0 : i32
    return %arg0, %c0_i32, %c0_i32_0 : i32, i32, i32
  }
}

</mosaic_0001>

<bundles_post_ra>
// kernel: aspp_forward.1
= control target key start
LH: loop header
LB: loop body
LE: loop exit
PB: predicated region body
PF: predicated region fallthrough
CT: control target
= control target key end

     0   :  { %s2618_s21 = smov 0   ;;  %s3244_s0 = inlined_call_operand.vmem [shape: f32[2,16,256], index: 0, kind: input, shape index: {}]   ;;  %s3245_s1 = inlined_call_operand.vmem [shape: bf16[64,144], index: 1, kind: input, shape index: {}]   ;;  %s3246_s2 = inlined_call_operand.vmem [shape: bf16[16,64], index: 2, kind: input, shape index: {}]   ;;  %s3247_s3 = inlined_call_operand.vmem [shape: bf16[16,16], index: 3, kind: input, shape index: {}]   ;;  %s3248_s4 = inlined_call_operand.vmem [shape: bf16[16,16], index: 4, kind: input, shape index: {}]   ;;  %s3249_s5 = inlined_call_operand.vmem [shape: f32[96,1], index: 5, kind: input, shape index: {}]   ;;  %s3250_s6 = inlined_call_operand.vmem [shape: f32[2,16,640], index: 6, kind: output, shape index: {}]  }
   0x1 LB: > { %s2265_s22 = sadd.s32 4294967295, %s2556_s21   ;;  %p2269_p0 = scmp.ge.s32.totalorder %s2556_s21, 1  ;;  %s2556_s21 = sphi %s2618_s21, %s16_s21  }
   0x2   : > { %p212_p1 = scmp.lt.s32.totalorder %s2556_s21, 3 }
   0x4   : > { %p213_p2 = pnand %p2269_p0, %p212_p1 }
   0x5   : > { %p2626_p3 = scmp.lt.s32.totalorder (!%p213_p2), %s2265_s22, 1  ;;  %s2559_s28 = smov (!%p213_p2), 20  }
   0x6   : > { %216 = sbr.rel (%p213_p2) target bundleno = 1013 (0x3f5), region = 44  ;;  %s2560_s29 = smov (!%p213_p2), 4  }
   0x7   : > { %s2561_s30 = smov (!%p213_p2), 76   ;;  %s2562_s7 = smov (!%p213_p2), 44  }
   0x8   : > { %s2563_s8 = smov (!%p213_p2), 28   ;;  %s2564_s9 = smov (!%p213_p2), 100  }
   0x9   : > { %s2565_s10 = smov (!%p213_p2), 68   ;;  %s2566_s11 = smov (!%p213_p2), 92  }
   0xa   : > { %s2567_s12 = smov (!%p213_p2), 108   ;;  %s2568_s13 = smov (!%p213_p2), 52  }
   0xb   : > { %v2558_v0 = vmov 0.0   ;;  %s3253_s22 = smov (!%p2626_p3, %s2265_s22), 1  ;;  %s2569_s14 = smov 124   ;;  %v2575_v5 = vmov 0.0|0.0   ;;  %vm382_vm0 = vcmask 162848   ;;  %vm304_vm1 = vcmask 294048  }
   0xc   : > { %259 = vst [vmem:[#allocation2 + $0x30] sm:$0xff] %v2558_v0  ;;  %253 = vst [vmem:[#allocation2] sm:$0xff] %v2558_v0  ;;  %s2402_s24 = sshll.u32 %s3253_s22, 5  ;;  %s2570_s15 = smov 116   ;;  %vm343_vm2 = vcmask 228448   ;;  %vm395_vm3 = vcmask 490848  }
   0xd   : > { %256 = vst [vmem:[#allocation2 + $0x18] sm:$0xff] %v2558_v0  ;;  %257 = vst [vmem:[#allocation2 + $0x20] sm:$0xff] %v2558_v0  ;;  %s246_s27 = scalar_lea.vmem %s3244_s0, %s2402_s24  ;;  %s2571_s16 = smov 36   ;;  %vm317_vm4 = vcmask 622048   ;;  %vm356_vm5 = vcmask 556448   ;;  %vm408_vm6 = vcmask 818848  }
   0xe   : > { %258 = vst [vmem:[#allocation2 + $0x28] sm:$0xff] %v2558_v0  ;;  %260 = vst [vmem:[#allocation2 + $0x38] sm:$0xff] %v2558_v0  ;;  %v372_v1 = vld [vmem:[%s246_s27] sm:$0xff]  ;;  %v373_v2 = vld [vmem:[%s246_s27 + $0x10] sm:$0xff]  ;;  %s2572_s17 = smov 12   ;;  %s2573_s18 = smov 60  }
   0xf   : > { %261 = vst [vmem:[#allocation2 + $0x40] sm:$0xff] %v2558_v0  ;;  %270 = vst [vmem:[#allocation2 + $0x88] sm:$0xff] %v2558_v0  ;;  %376 = vrot.lane.b32.xlu0 %v372_v1, %s2559_s28  ;;  %298 = vrot.lane.b32.xlu1 %v372_v1, %s2560_s29  ;;  %v385_v3 = vld [vmem:[%s246_s27 + $0x8] sm:$0xff]  ;;  %v386_v4 = vld [vmem:[%s246_s27 + $0x18] sm:$0xff]  ;;  %s2574_s19 = smov 84   ;;  %s2576_s20 = smov 64  }
  0x10   : > { %271 = vst [vmem:[#allocation2 + $0x90] sm:$0xff] %v2558_v0  ;;  %272 = vst [vmem:[#allocation2 + $0x98] sm:$0xff] %v2558_v0  ;;  %vm421_vm7 = vcmask 1048544   ;;  %vm423_vm8 = vcmask 97280   ;;  %vm291_vm9 = vcmask 1015648   ;;  %vm330_vm10 = vcmask 950048  }
  0x11   : > { %273 = vst [vmem:[#allocation2 + $0xa0] sm:$0xff] %v2558_v0  ;;  %274 = vst [vmem:[#allocation2 + $0xa8] sm:$0xff] %v2558_v0  ;;  %vm369_vm11 = vcmask 884448   ;;  %vm437_vm12 = vcmask 425248   ;;  %s2577_s23 = smov 104   ;;  %vm465_vm13 = vcmask 31744  }
  0x12   : > { %275 = vst [vmem:[#allocation2 + $0xb0] sm:$0xff] %v2558_v0  ;;  %vm450_vm14 = vcmask 753248   ;;  %vm463_vm15 = vcmask 1048480   ;;  %s2578_s24 = smov 8   ;;  %s2579_s25 = smov 32  }
  0x13   : > { %378 = vrot.lane.b32.xlu0 %v373_v2, %s2559_s28  ;;  %300 = vrot.lane.b32.xlu1 %v373_v2, %s2560_s29  ;;  %s2580_s26 = smov 40   ;;  %s2490_s29 = smul.u32 80, %s3253_s22 }
  0x17   : > { %337 = vrot.lane.b32.xlu0 %v372_v1, %s2561_s30  ;;  %339 = vrot.lane.b32.xlu1 %v373_v2, %s2561_s30 }
  0x1b   : > { %389 = vrot.lane.b32.xlu0 %v385_v3, %s2562_s7  ;;  %391 = vrot.lane.b32.xlu1 %v386_v4, %s2562_s7 }
  0x1f   : > { %311 = vrot.lane.b32.xlu0 %v372_v1, %s2563_s8  ;;  %313 = vrot.lane.b32.xlu1 %v373_v2, %s2563_s8  ;;  %s3229_s8 = scalar_lea.vmem %s3250_s6, %s2490_s29 }
  0x23   : > { %350 = vrot.lane.b32.xlu0 %v372_v1, %s2564_s9  ;;  %352 = vrot.lane.b32.xlu1 %v373_v2, %s2564_s9 }
  0x27   : > { %402 = vrot.lane.b32.xlu0 %v385_v3, %s2565_s10  ;;  %404 = vrot.lane.b32.xlu1 %v386_v4, %s2565_s10 }
  0x2b   : > { %415 = vrot.lane.b32.xlu0 %v385_v3, %s2566_s11  ;;  %417 = vrot.lane.b32.xlu1 %v386_v4, %s2566_s11 }
  0x2f   : > { %287 = vrot.lane.b32.xlu1 %v373_v2, %s2567_s12  ;;  %285 = vrot.lane.b32.xlu0 %v372_v1, %s2567_s12 }
  0x33   : > { %326 = vrot.lane.b32.xlu1 %v373_v2, %s2568_s13  ;;  %324 = vrot.lane.b32.xlu0 %v372_v1, %s2568_s13 }
  0x37   : > { %365 = vrot.lane.b32.xlu1 %v373_v2, %s2569_s14  ;;  %363 = vrot.lane.b32.xlu0 %v372_v1, %s2569_s14 }
  0x3b   : > { %433 = vrot.lane.b32.xlu1 %v386_v4, %s2570_s15  ;;  %431 = vrot.lane.b32.xlu0 %v385_v3, %s2570_s15 }
  0x3f   : > { %459 = vrot.lane.b32.xlu1 %v386_v4, %s2571_s16  ;;  %457 = vrot.lane.b32.xlu0 %v385_v3, %s2571_s16 }
  0x43   : > { %446 = vrot.lane.b32.xlu1 %v386_v4, %s2572_s17  ;;  %444 = vrot.lane.b32.xlu0 %v385_v3, %s2572_s17 }
  0x47   : > { %475 = vrot.lane.b32.xlu1 %v386_v4, %s2573_s18  ;;  %473 = vrot.lane.b32.xlu0 %v385_v3, %s2573_s18 }
  0x4b   : > { %488 = vrot.lane.b32.xlu1 %v386_v4, %s2574_s19  ;;  %486 = vrot.lane.b32.xlu0 %v385_v3, %s2574_s19 }
  0x4f   : > { %1086 = vrot.lane.b32.xlu0 %v2575_v5, %s2568_s13  ;;  %1088 = vrot.lane.b32.xlu1 %v2575_v5, %s2568_s13 }
  0x53   : > { %1092 = vrot.lane.b32.xlu0 %v2575_v5, %s2568_s13  ;;  %1094 = vrot.lane.b32.xlu1 %v2575_v5, %s2568_s13 }
  0x57   : > { %1003 = vrot.lane.b32.xlu0 %v2575_v5, %s2576_s20  ;;  %1005 = vrot.lane.b32.xlu1 %v2575_v5, %s2576_s20 }
  0x5b   : > { %1009 = vrot.lane.b32.xlu0 %v2575_v5, %s2576_s20  ;;  %1011 = vrot.lane.b32.xlu1 %v2575_v5, %s2576_s20 }
  0x81   : > { %v377_v6 = vpop.permute.xlu0 %376  ;;  %v299_v7 = vpop.permute.xlu1 %298 }
  0x82   : > { %383 = vst.msk [vmem:[#allocation2 + $0x30] sm:$0xff] %vm382_vm0, %v377_v6 }
  0x83   : > { %305 = vst.msk [vmem:[#allocation2 + $0x20] sm:$0xff] %vm304_vm1, %v299_v7 }
  0x85   : > { %v379_v8 = vpop.permute.xlu0 %378  ;;  %v301_v9 = vpop.permute.xlu1 %300 }
  0x86   : > { %384 = vst.msk [vmem:[#allocation2 + $0xa0] sm:$0xff] %vm382_vm0, %v379_v8  ;;  %vm479_vm0 = vcmask 359648  }
  0x87   : > { %306 = vst.msk [vmem:[#allocation2 + $0x90] sm:$0xff] %vm304_vm1, %v301_v9  ;;  %vm492_vm1 = vcmask 687648  }
  0x89   : > { %v338_v10 = vpop.permute.xlu0 %337  ;;  %v340_v11 = vpop.permute.xlu1 %339 }
  0x8a   : > { %344 = vst.msk [vmem:[#allocation2 + $0x28] sm:$0xff] %vm343_vm2, %v338_v10  ;;  %345 = vst.msk [vmem:[#allocation2 + $0x98] sm:$0xff] %vm343_vm2, %v340_v11  ;;  %vm555_vm2 = vcmask 1043456  }
  0x8d   : > { %v390_v12 = vpop.permute.xlu0 %389  ;;  %v392_v13 = vpop.permute.xlu1 %391 }
  0x8e   : > { %396 = vst.msk [vmem:[#allocation2 + $0x30] sm:$0xff] %vm395_vm3, %v390_v12  ;;  %397 = vst.msk [vmem:[#allocation2 + $0xa0] sm:$0xff] %vm395_vm3, %v392_v13  ;;  %vm1103_vm3 = vcmask 424960  }
  0x91   : > { %v312_v14 = vpop.permute.xlu0 %311  ;;  %v314_v15 = vpop.permute.xlu1 %313 }
  0x92   : > { %318 = vst.msk [vmem:[#allocation2 + $0x20] sm:$0xff] %vm317_vm4, %v312_v14  ;;  %319 = vst.msk [vmem:[#allocation2 + $0x90] sm:$0xff] %vm317_vm4, %v314_v15  ;;  %vm1020_vm4 = vcmask 523264  }
  0x95   : > { %v351_v16 = vpop.permute.xlu0 %350  ;;  %v353_v17 = vpop.permute.xlu1 %352 }
  0x96   : > { %357 = vst.msk [vmem:[#allocation2 + $0x28] sm:$0xff] %vm356_vm5, %v351_v16  ;;  %358 = vst.msk [vmem:[#allocation2 + $0x98] sm:$0xff] %vm356_vm5, %v353_v17  ;;  %vm1588_vm5 = vcmask 130048  }
  0x99   : > { %v403_v18 = vpop.permute.xlu0 %402  ;;  %v405_v19 = vpop.permute.xlu1 %404 }
  0x9a   : > { %409 = vst.msk [vmem:[#allocation2 + $0x30] sm:$0xff] %vm408_vm6, %v403_v18  ;;  %410 = vst.msk [vmem:[#allocation2 + $0xa0] sm:$0xff] %vm408_vm6, %v405_v19  ;;  %vm771_vm6 = vcmask 850944  }
  0x9d   : > { %v416_v20 = vpop.permute.xlu0 %415  ;;  %v418_v21 = vpop.permute.xlu1 %417 }
  0x9e   : > { %422 = vst.msk [vmem:[#allocation2 + $0x30] sm:$0xff] %vm421_vm7, %v416_v20  ;;  %425 = vst.msk [vmem:[#allocation2 + $0xa0] sm:$0xff] %vm421_vm7, %v418_v21  ;;  %vm557_vm7 = vcmask 162816  }
  0x9f   : > { %424 = vst.msk [vmem:[#allocation2 + $0x38] sm:$0xff] %vm423_vm8, %v416_v20  ;;  %426 = vst.msk [vmem:[#allocation2 + $0xa8] sm:$0xff] %vm423_vm8, %v418_v21  ;;  %vm688_vm8 = vcmask 949248  }
  0xa1   : > { %v288_v22 = vpop.permute.xlu1 %287  ;;  %v286_v23 = vpop.permute.xlu0 %285 }
  0xa2   : > { %293 = vst.msk [vmem:[#allocation2 + $0x88] sm:$0xff] %vm291_vm9, %v288_v22  ;;  %292 = vst.msk [vmem:[#allocation2 + $0x18] sm:$0xff] %vm291_vm9, %v286_v23  ;;  %vm937_vm9 = vcmask 64512  }
  0xa5   : > { %v327_v24 = vpop.permute.xlu1 %326  ;;  %v325_v25 = vpop.permute.xlu0 %324  ;;  %v498_v45 = vld [vmem:[#allocation2 + $0x30] sm:$0xff]  ;;  %v504_v51 = vld [vmem:[#allocation2 + $0xa0] sm:$0xff] }
  0xa6   : > { %332 = vst.msk [vmem:[#allocation2 + $0x90] sm:$0xff] %vm330_vm10, %v327_v24  ;;  %331 = vst.msk [vmem:[#allocation2 + $0x20] sm:$0xff] %vm330_vm10, %v325_v25  ;;  %vm854_vm10 = vcmask 261120  }
  0xa9   : > { %v587_v26 = vld [vmem:[#allocation2 + $0x88] sm:$0xff]  ;;  %v582_v27 = vld [vmem:[#allocation2 + $0x18] sm:$0xff]  ;;  %v366_v28 = vpop.permute.xlu1 %365  ;;  %v364_v29 = vpop.permute.xlu0 %363 }
  0xaa   : > { %v2674_v30 = vpack.c.bf16 %v587_v26, %v2558_v0  ;;  %v2677_v31 = vpack.c.bf16 %v582_v27, %v2558_v0  ;;  %371 = vst.msk [vmem:[#allocation2 + $0x98] sm:$0xff] %vm369_vm11, %v366_v28  ;;  %370 = vst.msk [vmem:[#allocation2 + $0x28] sm:$0xff] %vm369_vm11, %v364_v29  ;;  %vm1186_vm11 = vcmask 326656  }
  0xac   : > { %625 = vst [vmem:[#allocation3 + $0x44] sm:$0xff] %v2674_v30  ;;  %754 = vrot.lane.b32.xlu0 %v2677_v31, %s2577_s23 }
  0xad   : > { %v2682_v32 = vld [vmem:[#allocation2 + $0x90] sm:$0xff]  ;;  %v583_v33 = vld [vmem:[#allocation2 + $0x20] sm:$0xff]  ;;  %v434_v34 = vpop.permute.xlu1 %433  ;;  %v432_v35 = vpop.permute.xlu0 %431 }
  0xae   : > { %v2414_v36 = vpack.c.bf16 %v2682_v32, %v2682_v32  ;;  %v2411_v37 = vpack.c.bf16 %v583_v33, %v583_v33  ;;  %439 = vst.msk [vmem:[#allocation2 + $0xa8] sm:$0xff] %vm437_vm12, %v434_v34  ;;  %438 = vst.msk [vmem:[#allocation2 + $0x38] sm:$0xff] %vm437_vm12, %v432_v35  ;;  %v2688_v41 = vpack.c.bf16 %v583_v33, %v582_v27  ;;  %vm2582_vm12 = vmmov 0  }
  0xaf   : > { %v2697_v46 = vpack.c.bf16 %v2682_v32, %v587_v26 }
  0xb0   : > { %626 = vst [vmem:[#allocation3 + $0x4c] sm:$0xf] %v2414_v36  ;;  %623 = vst [vmem:[#allocation3 + $0x38] sm:$0xf] %v2411_v37  ;;  %760 = vrot.lane.b32.xlu0 %v2674_v30, %s2577_s23 }
  0xb1   : > { %v460_v38 = vpop.permute.xlu1 %459  ;;  %v458_v39 = vpop.permute.xlu0 %457  ;;  %v715_v40 = vld [vmem:[#allocation2 + $0x28] sm:$0xff]  ;;  %v503_v48 = vld [vmem:[#allocation2 + $0x98] sm:$0xff] }
  0xb2   : > { %468 = vst.msk [vmem:[#allocation2 + $0xb0] sm:$0xff] %vm465_vm13, %v460_v38  ;;  %466 = vst.msk [vmem:[#allocation2 + $0x40] sm:$0xff] %vm465_vm13, %v458_v39  ;;  %v2690_v42 = vpack.c.bf16 %v715_v40, %v583_v33  ;;  %v2699_v47 = vpack.c.bf16 %v498_v45, %v715_v40  ;;  %v2705_v52 = vpack.c.bf16 %v504_v51, %v503_v48  ;;  %v2581_v33 = vmov 0  }
  0xb3   : > { %v2426_v11 = vpack.c.bf16 %v503_v48, %v2682_v32  ;;  %2524 = vset.pattern.permute.xlu1 %v2581_v33  ;;  %2523 = vset.pattern.permute.xlu0 %v2581_v33 }
  0xb4   : > { %537 = vrot.lane.b32.xlu0 %v2688_v41, %s2559_s28  ;;  %756 = vrot.lane.b32.xlu1 %v2690_v42, %s2577_s23 }
  0xb5   : > { %v447_v43 = vpop.permute.xlu1 %446  ;;  %v445_v44 = vpop.permute.xlu0 %444 }
  0xb6   : > { %452 = vst.msk [vmem:[#allocation2 + $0xa8] sm:$0xff] %vm450_vm14, %v447_v43  ;;  %451 = vst.msk [vmem:[#allocation2 + $0x38] sm:$0xff] %vm450_vm14, %v445_v44 }
  0xb7   : > { %467 = vst.msk [vmem:[#allocation2 + $0xa8] sm:$0xff] %vm463_vm15, %v460_v38  ;;  %464 = vst.msk [vmem:[#allocation2 + $0x38] sm:$0xff] %vm463_vm15, %v458_v39 }
  0xb8   : > { %543 = vrot.lane.b32.xlu0 %v2697_v46, %s2559_s28  ;;  %539 = vrot.lane.b32.xlu1 %v2699_v47, %s2559_s28 }
  0xb9   : > { %v476_v49 = vpop.permute.xlu1 %475  ;;  %v474_v50 = vpop.permute.xlu0 %473 }
  0xba   : > { %481 = vst.msk [vmem:[#allocation2 + $0xb0] sm:$0xff] %vm479_vm0, %v476_v49  ;;  %480 = vst.msk [vmem:[#allocation2 + $0x40] sm:$0xff] %vm479_vm0, %v474_v50 }
  0xbc   : > { %545 = vrot.lane.b32.xlu1 %v2705_v52, %s2559_s28 }
  0xbd   : > { %v489_v53 = vpop.permute.xlu1 %488  ;;  %v487_v54 = vpop.permute.xlu0 %486 }
  0xbe   : > { %494 = vst.msk [vmem:[#allocation2 + $0xb0] sm:$0xff] %vm492_vm1, %v489_v53  ;;  %493 = vst.msk [vmem:[#allocation2 + $0x40] sm:$0xff] %vm492_vm1, %v487_v54  ;;  %v505_v59 = vld [vmem:[#allocation2 + $0xa8] sm:$0xff]  ;;  %v499_v63 = vld [vmem:[#allocation2 + $0x38] sm:$0xff] }
  0xc1   : > { %v2709_v55 = vpop.permute.xlu0 %1086  ;;  %v1089_v56 = vpop.permute.xlu1 %1088 }
  0xc2   : > { %v1097_v57 = vrot.slane %v2709_v55, 4  ;;  %v1098_v58 = vrot.slane %v1089_v56, 4 }
  0xc4   : > { %v1105_v60 = vsel %vm555_vm2, %v1097_v57, %v1098_v58  ;;  %v1107_v61 = vsel %vm1103_vm3, %v1089_v56, %v1098_v58 }
  0xc5   : > { %v506_v62 = vld [vmem:[#allocation2 + $0xb0] sm:$0xff]  ;;  %v500_v0 = vld [vmem:[#allocation2 + $0x40] sm:$0xff]  ;;  %v1106_v1 = vsel %vm1103_vm3, %v2709_v55, %v1105_v60  ;;  %1121 = vst [vmem:[#allocation3 + $0x128] sm:$0xf] %v1107_v61  ;;  %v2718_v2 = vpop.permute.xlu0 %1092  ;;  %v1095_v3 = vpop.permute.xlu1 %1094 }
  0xc6   : > { %v2720_v4 = vpack.c.bf16 %v506_v62, %v505_v59  ;;  %v2722_v6 = vpack.c.bf16 %v500_v0, %v499_v63  ;;  %v1100_v7 = vrot.slane %v2718_v2, 4  ;;  %v1101_v8 = vrot.slane %v1095_v3, 4 }
  0xc8   : > { %547 = vrot.lane.b32.xlu1 %v2720_v4, %s2559_s28  ;;  %541 = vrot.lane.b32.xlu0 %v2722_v6, %s2559_s28  ;;  %v1110_v9 = vsel %vm555_vm2, %v1100_v7, %v1101_v8  ;;  %v1112_v10 = vsel %vm1103_vm3, %v1095_v3, %v1101_v8 }
  0xc9   : > { %v1111_v12 = vsel %vm1103_vm3, %v2718_v2, %v1110_v9  ;;  %1124 = vst [vmem:[#allocation3 + $0x13c] sm:$0xf] %v1112_v10  ;;  %v2736_v13 = vpop.permute.xlu0 %1003  ;;  %v1006_v14 = vpop.permute.xlu1 %1005 }
  0xca   : > { %v1014_v15 = vrot.slane %v2736_v13, 4  ;;  %v1015_v16 = vrot.slane %v1006_v14, 4  ;;  %v2373_v17 = vcombine.high %v1106_v1, %v1111_v12  ;;  %v2372_v18 = vcombine.low %v1106_v1, %v1111_v12 }
  0xcc   : > { %762 = vrot.lane.b32.xlu1 %v2426_v11, %s2577_s23  ;;  %671 = vrot.lane.b32.xlu0 %v2677_v31, %s2570_s15  ;;  %v1022_v19 = vsel %vm555_vm2, %v1014_v15, %v1015_v16  ;;  %v1024_v20 = vsel %vm1020_vm4, %v1006_v14, %v1015_v16 }
  0xcd   : > { %v1023_v21 = vsel %vm1020_vm4, %v2736_v13, %v1022_v19  ;;  %1038 = vst [vmem:[#allocation3 + $0x100] sm:$0xf] %v1024_v20  ;;  %v2748_v22 = vpop.permute.xlu0 %1009  ;;  %v1012_v23 = vpop.permute.xlu1 %1011  ;;  %1674 = vmatprep.subr.bf16.mxu1 %v2373_v17  ;;  %v1226_v13 = vld [vmem:[#allocation3 + $0x44] sm:$0xff] }
  0xce   : > { %v1017_v24 = vrot.slane %v2748_v22, 4  ;;  %v1018_v25 = vrot.slane %v1012_v23, 4  ;;  %1675 = vmatpush1.bf16.msra.mxu1 %v2372_v18 }
  0xd0   : > { %673 = vrot.lane.b32.xlu1 %v2690_v42, %s2570_s15  ;;  %677 = vrot.lane.b32.xlu0 %v2674_v30, %s2570_s15  ;;  %v1027_v26 = vsel %vm555_vm2, %v1017_v24, %v1018_v25  ;;  %v1029_v27 = vsel %vm1020_vm4, %v1012_v23, %v1018_v25  ;;  %v2799_v30 = vld [vmem:[%s3245_s1 + $0x4] ss:$8 sps:$4 sm:$0xff]  }
  0xd1   : > { %v1028_v28 = vsel %vm1020_vm4, %v2748_v22, %v1027_v26  ;;  %1041 = vst [vmem:[#allocation3 + $0x114] sm:$0xf] %v1029_v27  ;;  %2380 = vmatprep.mubr.msk.bf16.mxu0 %vm1588_vm5, %v2799_v30  ;;  %2384 = vmatprep.mubr.msk.bf16.mxu1 %vm1588_vm5, %v2799_v30 }
  0xd2   : > { %v2368_v29 = vcombine.high %v1023_v21, %v1028_v28  ;;  %v2367_v32 = vcombine.low %v1023_v21, %v1028_v28 }
  0xd4   : > { %679 = vrot.lane.b32.xlu1 %v2426_v11, %s2570_s15  ;;  %918 = vrot.lane.b32.xlu0 %v2688_v41, %s2578_s24 }
  0xd5   : > { %1676 = vmatprep.subr.bf16.mxu1 %v2368_v29 }
  0xd6   : > { %1677 = vmatpush1.bf16.msra.mxu1 %v2367_v32 }
  0xd8   : > { %922 = vrot.lane.b32.xlu1 %v2722_v6, %s2578_s24  ;;  %920 = vrot.lane.b32.xlu0 %v2699_v47, %s2578_s24 }
  0xdc   : > { %928 = vrot.lane.b32.xlu1 %v2720_v4, %s2578_s24  ;;  %926 = vrot.lane.b32.xlu0 %v2705_v52, %s2578_s24 }
  0xe0   : > { %839 = vrot.lane.b32.xlu1 %v2722_v6, %s2579_s25  ;;  %837 = vrot.lane.b32.xlu0 %v2699_v47, %s2579_s25 }
  0xe4   : > { %845 = vrot.lane.b32.xlu1 %v2720_v4, %s2579_s25  ;;  %843 = vrot.lane.b32.xlu0 %v2705_v52, %s2579_s25 }
  0xe8   : > { %924 = vrot.lane.b32.xlu1 %v2697_v46, %s2578_s24  ;;  %1084 = vrot.lane.b32.xlu0 %v2722_v6, %s2568_s13 }
  0xec   : > { %1090 = vrot.lane.b32.xlu1 %v2720_v4, %s2568_s13  ;;  %1001 = vrot.lane.b32.xlu0 %v2722_v6, %s2576_s20 }
  0xf0   : > { %1007 = vrot.lane.b32.xlu1 %v2720_v4, %s2576_s20  ;;  %1169 = vrot.lane.b32.xlu0 %v2575_v5, %s2580_s26 }
  0xf4   : > { %1171 = vrot.lane.b32.xlu1 %v2575_v5, %s2580_s26  ;;  %1175 = vrot.lane.b32.xlu0 %v2575_v5, %s2580_s26 }
  0xf8   : > { %1177 = vrot.lane.b32.xlu1 %v2575_v5, %s2580_s26  ;;  %835 = vrot.lane.b32.xlu0 %v2688_v41, %s2579_s25 }
  0xfc   : > { %841 = vrot.lane.b32.xlu1 %v2697_v46, %s2579_s25  ;;  %752 = vrot.lane.b32.xlu0 %v2575_v5, %s2577_s23 }
 0x100   : > { %758 = vrot.lane.b32.xlu1 %v2575_v5, %s2577_s23  ;;  %669 = vrot.lane.b32.xlu0 %v2575_v5, %s2570_s15 }
 0x104   : > { %675 = vrot.lane.b32.xlu1 %v2575_v5, %s2570_s15  ;;  %1167 = vrot.lane.b32.xlu0 %v2722_v6, %s2580_s26 }
 0x108   : > { %1173 = vrot.lane.b32.xlu1 %v2720_v4, %s2580_s26 }
 0x11e   : > { %v2807_v34 = vpop.permute.xlu0 %754 }
 0x11f   : > { %v765_v38 = vrot.slane %v2807_v34, 4 }
 0x122   : > { %v2809_v35 = vpop.permute.xlu0 %760 }
 0x123   : > { %v768_v14 = vrot.slane %v2809_v35, 4 }
 0x126   : > { %v757_v36 = vpop.permute.xlu1 %756  ;;  %v538_v37 = vpop.permute.xlu0 %537 }
 0x127   : > { %v766_v39 = vrot.slane %v757_v36, 4  ;;  %v549_v44 = vrot.slane %v538_v37, 4 }
 0x129   : > { %v773_v40 = vsel %vm555_vm2, %v765_v38, %v766_v39  ;;  %v775_v41 = vsel %vm771_vm6, %v757_v36, %v766_v39 }
 0x12a   : > { %v2818_v42 = vsel %vm771_vm6, %v2807_v34, %v773_v40  ;;  %789 = vst [vmem:[#allocation3 + $0x88] sm:$0xf] %v775_v41  ;;  %v540_v43 = vpop.permute.xlu1 %539  ;;  %v544_v46 = vpop.permute.xlu0 %543 }
 0x12b   : > { %v550_v45 = vrot.slane %v540_v43, 4  ;;  %v552_v50 = vrot.slane %v544_v46, 4 }
 0x12d   : > { %v556_v47 = vsel %vm555_vm2, %v549_v44, %v550_v45 }
 0x12e   : > { %v2822_v48 = vsel %vm557_vm7, %v538_v37, %v556_v47  ;;  %v546_v49 = vpop.permute.xlu1 %545 }
 0x12f   : > { %v553_v51 = vrot.slane %v546_v49, 4  ;;  %v1878_v0 = vunpack.c.l.bf16 %v2822_v48  ;;  %v1879_v1 = vunpack.c.h.bf16 %v2822_v48 }
 0x131   : > { %v562_v52 = vsel %vm555_vm2, %v552_v50, %v553_v51  ;;  %v1888_v20 = vadd.f32 %v1879_v1, %v1878_v0 }
 0x132   : > { %v2826_v53 = vsel %vm557_vm7, %v544_v46, %v562_v52 }
 0x133   : > { %v2336_v54 = vcombine.high %v2822_v48, %v2826_v53  ;;  %v2335_v56 = vcombine.low %v2822_v48, %v2826_v53  ;;  %v1883_v62 = vunpack.c.l.bf16 %v2826_v53  ;;  %v1884_v63 = vunpack.c.h.bf16 %v2826_v53  ;;  %v2529_v48 = vld [vmem:[#allocation3 + $0x100] ss:$20 sps:$4 sm:$0xff]  }
 0x135   : > { %v1894_v18 = vadd.f32 %v1884_v63, %v1883_v62 }
 0x13a   : > { %v548_v58 = vpop.permute.xlu1 %547  ;;  %v542_v59 = vpop.permute.xlu0 %541 }
 0x13b   : > { %v554_v60 = vrot.slane %v548_v58, 4  ;;  %v551_v61 = vrot.slane %v542_v59, 4 }
 0x13d   : > { %v564_v3 = vsel %vm555_vm2, %v553_v51, %v554_v60  ;;  %v566_v4 = vsel %vm557_vm7, %v548_v58, %v554_v60  ;;  %v559_v6 = vsel %vm555_vm2, %v550_v45, %v551_v61  ;;  %v561_v8 = vsel %vm557_vm7, %v542_v59, %v551_v61 }
 0x13e   : > { %v2841_v9 = vsel %vm557_vm7, %v546_v49, %v564_v3  ;;  %578 = vst [vmem:[#allocation3 + $0x24] sm:$0xf] %v566_v4  ;;  %v2844_v10 = vsel %vm557_vm7, %v540_v43, %v559_v6  ;;  %575 = vst [vmem:[#allocation3 + $0x10] sm:$0xf] %v561_v8  ;;  %v763_v11 = vpop.permute.xlu1 %762  ;;  %v2846_v12 = vpop.permute.xlu0 %671 }
 0x13f   : > { %v769_v16 = vrot.slane %v763_v11, 4  ;;  %v1885_v17 = vunpack.c.l.bf16 %v2841_v9  ;;  %v1880_v19 = vunpack.c.l.bf16 %v2844_v10  ;;  %v682_v32 = vrot.slane %v2846_v12, 4 }
 0x140   : > { %v1886_v37 = vunpack.c.h.bf16 %v2841_v9  ;;  %v1881_v39 = vunpack.c.h.bf16 %v2844_v10 }
 0x141   : > { %v778_v21 = vsel %vm555_vm2, %v768_v14, %v769_v16  ;;  %v780_v23 = vsel %vm771_vm6, %v763_v11, %v769_v16  ;;  %v1895_v25 = vadd.f32 %v1894_v18, %v1885_v17  ;;  %v1889_v29 = vadd.f32 %v1888_v20, %v1880_v19 }
 0x142   : > { %v2857_v26 = vsel %vm771_vm6, %v2809_v35, %v778_v21  ;;  %792 = vst [vmem:[#allocation3 + $0x9c] sm:$0xf] %v780_v23  ;;  %v674_v27 = vpop.permute.xlu1 %673  ;;  %v2859_v28 = vpop.permute.xlu0 %677 }
 0x143   : > { %v683_v36 = vrot.slane %v674_v27, 4  ;;  %v1896_v44 = vadd.f32 %v1895_v25, %v1886_v37  ;;  %v1890_v51 = vadd.f32 %v1889_v29, %v1881_v39  ;;  %v685_v52 = vrot.slane %v2859_v28, 4 }
 0x145   : > { %v690_v40 = vsel %vm555_vm2, %v682_v32, %v683_v36  ;;  %v692_v41 = vsel %vm688_vm8, %v674_v27, %v683_v36  ;;  %v1877_v43 = vld [vmem:[#allocation3 + $0x10] ss:$20 sps:$4 sm:$0xff]  }
 0x146   : > { %v2870_v45 = vsel %vm688_vm8, %v2846_v12, %v690_v40  ;;  %706 = vst [vmem:[#allocation3 + $0x60] sm:$0xf] %v692_v41  ;;  %v680_v46 = vpop.permute.xlu1 %679  ;;  %v919_v47 = vpop.permute.xlu0 %918  ;;  %v1887_v49 = vunpack.c.h.bf16 %v1877_v43  ;;  %v1882_v50 = vunpack.c.l.bf16 %v1877_v43 }
 0x147   : > { %v686_v58 = vrot.slane %v680_v46, 4  ;;  %v930_v3 = vrot.slane %v919_v47, 4 }
 0x148   : > { %v1897_v59 = vadd.f32 %v1896_v44, %v1887_v49  ;;  %v1891_v60 = vadd.f32 %v1890_v51, %v1882_v50 }
 0x149   : > { %v695_v61 = vsel %vm555_vm2, %v685_v52, %v686_v58  ;;  %v697_v62 = vsel %vm688_vm8, %v680_v46, %v686_v58 }
 0x14a   : > { %v2879_v63 = vsel %vm688_vm8, %v2859_v28, %v695_v61  ;;  %709 = vst [vmem:[#allocation3 + $0x74] sm:$0xf] %v697_v62  ;;  %v923_v0 = vpop.permute.xlu1 %922  ;;  %v921_v1 = vpop.permute.xlu0 %920  ;;  %1898 = vadd.xlane.f32.xlu1 %v1897_v59  ;;  %1892 = vadd.xlane.f32.xlu0 %v1891_v60  ;;  %v3047_v28 = vld [vmem:[%s3245_s1 + $0x24] ss:$8 sps:$4 sm:$0xff]  }
 0x14b   : > { %v932_v4 = vrot.slane %v923_v0, 4  ;;  %v931_v6 = vrot.slane %v921_v1, 4 }
 0x14d   : > { %v941_v8 = vsel %vm937_vm9, %v923_v0, %v932_v4  ;;  %v936_v11 = vsel %vm555_vm2, %v930_v3, %v931_v6  ;;  %v939_v16 = vsel %vm555_vm2, %v931_v6, %v932_v4 }
 0x14e   : > { %955 = vst [vmem:[#allocation3 + $0xd8] sm:$0xf] %v941_v8  ;;  %v2885_v17 = vsel %vm937_vm9, %v919_v47, %v936_v11  ;;  %v940_v18 = vsel %vm937_vm9, %v921_v1, %v939_v16  ;;  %v929_v19 = vpop.permute.xlu1 %928  ;;  %v927_v20 = vpop.permute.xlu0 %926  ;;  %v1906_v8 = vld [vmem:[%s3249_s5 + $0x48] sm:$0xff] }
 0x14f   : > { %v935_v21 = vrot.slane %v929_v19, 4  ;;  %v934_v23 = vrot.slane %v927_v20, 4 }
 0x151   : > { %v946_v25 = vsel %vm937_vm9, %v929_v19, %v935_v21  ;;  %v944_v27 = vsel %vm555_vm2, %v934_v23, %v935_v21  ;;  %v1276_v19 = vld [vmem:[%s3249_s5 + $0x30] sm:$0xff] }
 0x152   : > { %958 = vst [vmem:[#allocation3 + $0xec] sm:$0xf] %v946_v25  ;;  %v945_v29 = vsel %vm937_vm9, %v927_v20, %v944_v27  ;;  %v840_v36 = vpop.permute.xlu1 %839  ;;  %v2891_v37 = vpop.permute.xlu0 %837  ;;  %v1905_v20 = vld [vmem:[%s3249_s5 + $0x40] sm:$0xff] }
 0x153   : > { %v849_v39 = vrot.slane %v840_v36, 4  ;;  %v848_v40 = vrot.slane %v2891_v37, 4  ;;  %v2363_v41 = vcombine.high %v940_v18, %v945_v29  ;;  %v2362_v43 = vcombine.low %v940_v18, %v945_v29 }
 0x154   : > { %v2353_v18 = vcombine.high %v2818_v42, %v2857_v26  ;;  %v2352_v29 = vcombine.low %v2818_v42, %v2857_v26  ;;  %v1270_v42 = vld [vmem:[%s3249_s5] sm:$0xff] }
 0x155   : > { %v858_v44 = vsel %vm854_vm10, %v840_v36, %v849_v39  ;;  %v856_v46 = vsel %vm555_vm2, %v848_v40, %v849_v39  ;;  %1678 = vmatprep.subr.bf16.mxu1 %v2363_v41  ;;  %v2348_v41 = vcombine.high %v2870_v45, %v2879_v63 }
 0x156   : > { %872 = vst [vmem:[#allocation3 + $0xb0] sm:$0xf] %v858_v44  ;;  %v857_v47 = vsel %vm854_vm10, %v2891_v37, %v856_v46  ;;  %v846_v49 = vpop.permute.xlu1 %845  ;;  %v2900_v50 = vpop.permute.xlu0 %843  ;;  %1679 = vmatpush1.bf16.msra.mxu1 %v2362_v43  ;;  %v1277_v43 = vld [vmem:[%s3249_s5 + $0x38] sm:$0xff] }
 0x157   : > { %v852_v51 = vrot.slane %v846_v49, 4  ;;  %v851_v58 = vrot.slane %v2900_v50, 4 }
 0x159   : > { %v863_v59 = vsel %vm854_vm10, %v846_v49, %v852_v51  ;;  %v861_v60 = vsel %vm555_vm2, %v851_v58, %v852_v51  ;;  %v2347_v49 = vcombine.low %v2870_v45, %v2879_v63  ;;  %v2530_v53 = vld [vmem:[#allocation3 + $0xd8] ss:$20 sps:$4 sm:$0xff]  }
 0x15a   : > { %875 = vst [vmem:[#allocation3 + $0xc4] sm:$0xf] %v863_v59  ;;  %v862_v61 = vsel %vm854_vm10, %v2900_v50, %v861_v60  ;;  %v925_v62 = vpop.permute.xlu1 %924  ;;  %v1085_v0 = vpop.permute.xlu0 %1084  ;;  %v2343_v59 = vcombine.high %v2677_v31, %v1226_v13  ;;  %v1274_v60 = vld [vmem:[%s3249_s5 + $0x20] sm:$0xff]  ;;  %v3007_v50 = vld [vmem:[%s3245_s1 + $0x14] ss:$8 sps:$4 sm:$0xff]  }
 0x15b   : > { %v933_v1 = vrot.slane %v925_v62, 4  ;;  %v1096_v3 = vrot.slane %v1085_v0, 4  ;;  %v2358_v4 = vcombine.high %v857_v47, %v862_v61  ;;  %v2357_v6 = vcombine.low %v857_v47, %v862_v61  ;;  %1914 = vperm.xlu1 %2524, %v1906_v8  }
 0x15c   : > { %v2338_v8 = vcombine.high %v2844_v10, %v2841_v9 }
 0x15d   : > { %v942_v11 = vsel %vm555_vm2, %v933_v1, %v934_v23  ;;  %v1102_v16 = vsel %vm555_vm2, %v1096_v3, %v1097_v57  ;;  %1680 = vmatprep.subr.bf16.mxu1 %v2358_v4  ;;  %v2342_v1 = vcombine.low %v2677_v31, %v1226_v13 }
 0x15e   : > { %v2925_v21 = vsel %vm937_vm9, %v925_v62, %v942_v11  ;;  %v1104_v23 = vsel %vm1103_vm3, %v1085_v0, %v1102_v16  ;;  %v1091_v55 = vpop.permute.xlu1 %1090  ;;  %v1002_v25 = vpop.permute.xlu0 %1001  ;;  %1681 = vmatpush1.bf16.msra.mxu1 %v2357_v6  ;;  %v1275_v11 = vld [vmem:[%s3249_s5 + $0x28] sm:$0xff] }
 0x15f   : > { %v1099_v57 = vrot.slane %v1091_v55, 4  ;;  %v1013_v27 = vrot.slane %v1002_v25, 4  ;;  %1682 = vmatprep.subr.bf16.mxu1 %v2353_v18  ;;  %1310 = vperm.xlu1 %2524, %v1276_v19   ;;  %v2361_v6 = vcombine.high %v2885_v17, %v2925_v21 }
 0x160   : > { %1909 = vperm.xlu0 %2523, %v1905_v20  }
 0x161   : > { %v1108_v36 = vsel %vm555_vm2, %v1099_v57, %v1100_v7  ;;  %v1019_v39 = vsel %vm555_vm2, %v1013_v27, %v1014_v15 }
 0x162   : > { %v1109_v26 = vsel %vm1103_vm3, %v1091_v55, %v1108_v36  ;;  %v1021_v2 = vsel %vm1020_vm4, %v1002_v25, %v1019_v39  ;;  %v1008_v7 = vpop.permute.xlu1 %1007  ;;  %v2946_v44 = vpop.permute.xlu0 %1169  ;;  %1683 = vmatpush1.bf16.msra.mxu1 %v2352_v29  ;;  %v2360_v55 = vcombine.low %v2885_v17, %v2925_v21  ;;  %v2337_v25 = vcombine.low %v2844_v10, %v2841_v9  ;;  %v1272_v36 = vld [vmem:[%s3249_s5 + $0x10] sm:$0xff] }
 0x163   : > { %v1016_v15 = vrot.slane %v1008_v7, 4  ;;  %1684 = vmatprep.subr.bf16.mxu1 %v2348_v41  ;;  %v2371_v46 = vcombine.high %v1104_v23, %v1109_v26  ;;  %v2370_v47 = vcombine.low %v1104_v23, %v1109_v26  ;;  %1315 = vperm.xlu1 %2524, %v1277_v43   ;;  %v1180_v45 = vrot.slane %v2946_v44, 4  ;;  %v1273_v26 = vld [vmem:[%s3249_s5 + $0x18] sm:$0xff] }
 0x164   : > { %1280 = vperm.xlu0 %2523, %v1270_v42  }
 0x165   : > { %v1025_v51 = vsel %vm555_vm2, %v1016_v15, %v1017_v24  ;;  %1601 = vmatprep.subr.bf16.mxu0 %v2371_v46 }
 0x166   : > { %v1026_v61 = vsel %vm1020_vm4, %v1008_v7, %v1025_v51  ;;  %v1172_v62 = vpop.permute.xlu1 %1171  ;;  %v2958_v0 = vpop.permute.xlu0 %1175  ;;  %1602 = vmatpush1.bf16.msra.mxu0 %v2370_v47  ;;  %1685 = vmatpush1.bf16.msra.mxu1 %v2347_v49  ;;  %v3012_v47 = vld [vmem:[%s3245_s1] ss:$8 sps:$4 sm:$0xff]  }
 0x167   : > { %v1181_v63 = vrot.slane %v1172_v62, 4  ;;  %1686 = vmatprep.subr.bf16.mxu1 %v2343_v59  ;;  %v2366_v22 = vcombine.high %v1021_v2, %v1026_v61  ;;  %v2365_v24 = vcombine.low %v1021_v2, %v1026_v61  ;;  %1300 = vperm.xlu1 %2524, %v1274_v60   ;;  %v1183_v19 = vrot.slane %v2958_v0, 4  ;;  %v3014_v49 = vld [vmem:[#allocation2] sm:$0xff]  ;;  %v1271_v60 = vld [vmem:[%s3249_s5 + $0x8] sm:$0xff] }
 0x169   : > { %v1188_v3 = vsel %vm555_vm2, %v1180_v45, %v1181_v63  ;;  %v1190_v4 = vsel %vm1186_vm11, %v1172_v62, %v1181_v63  ;;  %1603 = vmatprep.subr.bf16.mxu0 %v2366_v22 }
 0x16a   : > { %v1189_v31 = vsel %vm1186_vm11, %v2946_v44, %v1188_v3  ;;  %1204 = vst [vmem:[#allocation3 + $0x150] sm:$0xf] %v1190_v4  ;;  %v1178_v16 = vpop.permute.xlu1 %1177  ;;  %v836_v18 = vpop.permute.xlu0 %835  ;;  %1604 = vmatpush1.bf16.msra.mxu0 %v2365_v24  ;;  %1687 = vmatpush1.bf16.msra.mxu1 %v2342_v1  ;;  %v3040_v3 = vld [vmem:[%s3245_s1 + $0x10] ss:$8 sps:$4 sm:$0xff]  }
 0x16b   : > { %v1184_v20 = vrot.slane %v1178_v16, 4  ;;  %v847_v23 = vrot.slane %v836_v18, 4  ;;  %1605 = vmatprep.subr.bf16.mxu0 %v2361_v6  ;;  %1688 = vmatprep.subr.bf16.mxu1 %v2338_v8 }
 0x16c   : > { %1305 = vperm.xlu1 %2524, %v1275_v11   ;;  %v2341_v11 = vcombine.high %v2575_v5, %v2575_v5 }
 0x16d   : > { %v1193_v57 = vsel %vm555_vm2, %v1183_v19, %v1184_v20  ;;  %v1195_v27 = vsel %vm1186_vm11, %v1178_v16, %v1184_v20  ;;  %v853_v29 = vsel %vm555_vm2, %v847_v23, %v848_v40  ;;  %v2542_v20 = vld [vmem:[%s3245_s1 + $0x20] ss:$8 sps:$4 sm:$0xff]   ;;  %v2545_v23 = vld [vmem:[%s3245_s1 + $0x30] ss:$8 sps:$4 sm:$0xff]  }
 0x16e   : > { %v1194_v17 = vsel %vm1186_vm11, %v2958_v0, %v1193_v57  ;;  %1207 = vst [vmem:[#allocation3 + $0x164] sm:$0xf] %v1195_v27  ;;  %v855_v9 = vsel %vm854_vm10, %v836_v18, %v853_v29  ;;  %v842_v10 = vpop.permute.xlu1 %841  ;;  %v753_v21 = vpop.permute.xlu0 %752  ;;  %1606 = vmatpush1.bf16.msra.mxu0 %v2360_v55  ;;  %1689 = vmatpush1.bf16.msra.mxu1 %v2337_v25  ;;  %v2543_v0 = vld [vmem:[%s3245_s1 + $0x34] ss:$8 sps:$4 sm:$0xff]   ;;  %v2534_v57 = vld [vmem:[#allocation3 + $0x38] ss:$20 sps:$4 sm:$0xff]  }
 0x16f   : > { %v850_v39 = vrot.slane %v842_v10, 4  ;;  %v764_v41 = vrot.slane %v753_v21, 4  ;;  %v2378_v43 = vcombine.high %v1189_v31, %v1194_v17  ;;  %v2377_v37 = vcombine.low %v1189_v31, %v1194_v17  ;;  %v2528_v55 = vld [vmem:[#allocation3 + $0x128] ss:$20 sps:$4 sm:$0xff]   ;;  %v2533_v25 = vld [vmem:[#allocation3 + $0x60] ss:$20 sps:$4 sm:$0xff]  }
 0x170   : > { %1290 = vperm.xlu1 %2524, %v1272_v36   ;;  %v2340_v18 = vcombine.low %v2575_v5, %v2575_v5  ;;  %v2535_v27 = vld [vmem:[#allocation3 + $0x10] ss:$20 sps:$4 sm:$0xff]  }
 0x171   : > { %v859_v40 = vsel %vm555_vm2, %v850_v39, %v851_v58  ;;  %v770_v42 = vsel %vm555_vm2, %v764_v41, %v765_v38  ;;  %1704 = vmatprep.subr.bf16.mxu1 %v2378_v43 }
 0x172   : > { %v860_v2 = vsel %vm854_vm10, %v842_v10, %v859_v40  ;;  %v772_v7 = vsel %vm771_vm6, %v753_v21, %v770_v42  ;;  %v759_v13 = vpop.permute.xlu1 %758  ;;  %v670_v15 = vpop.permute.xlu0 %669  ;;  %1705 = vmatpush2.bf16.msra.mxu1 %v2377_v37  ;;  %v2546_v21 = vld [vmem:[%s3247_s3] sm:$0xff]  }
 0x173   : > { %v767_v34 = vrot.slane %v759_v13, 4  ;;  %v681_v58 = vrot.slane %v670_v15, 4  ;;  %v2356_v38 = vcombine.high %v855_v9, %v860_v2  ;;  %v2355_v46 = vcombine.low %v855_v9, %v860_v2  ;;  %2466 = vmatprep.subr.bf16.mxu1 %v3014_v49 }
 0x174   : > { %1295 = vperm.xlu1 %2524, %v1273_v26  }
 0x175   : > { %v776_v51 = vsel %vm555_vm2, %v767_v34, %v768_v14  ;;  %v687_v59 = vsel %vm555_vm2, %v681_v58, %v682_v32  ;;  %1607 = vmatprep.subr.bf16.mxu0 %v2356_v38  ;;  %1707 = vmatmul.mubr.bf16.vlgmr.msra.gmra.mxu1 %v3012_v47  ;;  %v2539_v29 = vld [vmem:[#allocation3 + $0x150] ss:$20 sps:$4 sm:$0xff]  }
 0x176   : > { %v777_v61 = vsel %vm771_vm6, %v759_v13, %v776_v51  ;;  %v689_v62 = vsel %vm688_vm8, %v670_v15, %v687_v59  ;;  %v676_v63 = vpop.permute.xlu1 %675  ;;  %v1168_v22 = vpop.permute.xlu0 %1167  ;;  %1608 = vmatpush1.bf16.msra.mxu0 %v2355_v46  ;;  %2385 = vmatprep.mubr.msk.bf16.mxu1 %vm1588_vm5, %v3007_v50 }
 0x177   : > { %v684_v35 = vrot.slane %v676_v63, 4  ;;  %v1179_v12 = vrot.slane %v1168_v22, 4  ;;  %v2351_v14 = vcombine.high %v772_v7, %v777_v61  ;;  %v2350_v32 = vcombine.low %v772_v7, %v777_v61 }
 0x178   : > { %1285 = vperm.xlu1 %2524, %v1271_v60  }
 0x179   : > { %v693_v24 = vsel %vm555_vm2, %v684_v35, %v685_v52  ;;  %v1185_v1 = vsel %vm555_vm2, %v1179_v12, %v1180_v45  ;;  %1609 = vmatprep.subr.bf16.mxu0 %v2351_v14 }
 0x17a   : > { %v694_v4 = vsel %vm688_vm8, %v676_v63, %v693_v24  ;;  %v1187_v6 = vsel %vm1186_vm11, %v1168_v22, %v1185_v1  ;;  %v1174_v8 = vpop.permute.xlu1 %1173  ;;  %1610 = vmatpush1.bf16.msra.mxu0 %v2350_v32 }
 0x17b   : > { %v1182_v52 = vrot.slane %v1174_v8, 4  ;;  %v2346_v44 = vcombine.high %v689_v62, %v694_v4  ;;  %v2345_v45 = vcombine.low %v689_v62, %v694_v4 }
 0x17d   : > { %v1191_v31 = vsel %vm555_vm2, %v1182_v52, %v1183_v19  ;;  %1611 = vmatprep.subr.bf16.mxu0 %v2346_v44  ;;  %1717 = vmatmul.mubr.bf16.gmra.mxu1 %v3040_v3 }
 0x17e   : > { %v1192_v16 = vsel %vm1186_vm11, %v1174_v8, %v1191_v31  ;;  %1612 = vmatpush1.bf16.msra.mxu0 %v2345_v45  ;;  %2386 = vmatprep.mubr.msk.bf16.mxu1 %vm1588_vm5, %v3047_v28 }
 0x17f   : > { %1613 = vmatprep.subr.bf16.mxu0 %v2341_v11  ;;  %v2376_v19 = vcombine.high %v1187_v6, %v1192_v16  ;;  %v2375_v5 = vcombine.low %v1187_v6, %v1192_v16 }
 0x182   : > { %1614 = vmatpush1.bf16.msra.mxu0 %v2340_v18 }
 0x183   : > { %1615 = vmatprep.subr.bf16.mxu0 %v2336_v54  ;;  %v2531_v54 = vld [vmem:[#allocation3 + $0xb0] ss:$20 sps:$4 sm:$0xff]  }
 0x185   : > { %1727 = vmatmul.mubr.bf16.gmra.mxu1 %v2542_v20 }
 0x186   : > { %1616 = vmatpush1.bf16.msra.mxu0 %v2335_v56  ;;  %2387 = vmatprep.mubr.msk.bf16.mxu1 %vm1588_vm5, %v2543_v0  ;;  %v2532_v56 = vld [vmem:[#allocation3 + $0x88] ss:$20 sps:$4 sm:$0xff]  }
 0x187   : > { %1631 = vmatprep.subr.bf16.mxu0 %v2376_v19 }
 0x18a   : > { %1632 = vmatpush2.bf16.msra.mxu0 %v2375_v5 }
 0x18b   : > { %1747 = vmatprep.subr.bf16.mxu0 %v2581_v33 }
 0x18d   : > { %1634 = vmatmul.mubr.bf16.vlgmr.msra.gmra.mxu0 %v3012_v47  ;;  %1737 = vmatmul.mubr.bf16.gmra.mxu1 %v2545_v23 }
 0x18e   : > { %1748 = vmatpush1.bf16.msra.mxu0 %v2528_v55  ;;  %2381 = vmatprep.mubr.msk.bf16.mxu0 %vm1588_vm5, %v3007_v50 }
 0x18f   : > { %1749 = vmatprep.subr.bf16.mxu0 %v2581_v33  ;;  %2468 = vmatprep.mubr.msk.bf16.mxu1 %vm2582_vm12, %v3014_v49 }
 0x192   : > { %1750 = vmatpush1.bf16.msra.mxu0 %v2529_v48 }
 0x193   : > { %1751 = vmatprep.subr.bf16.mxu0 %v2581_v33 }
 0x195   : > { %1644 = vmatmul.mubr.bf16.gmra.mxu0 %v3040_v3 }
 0x196   : > { %1752 = vmatpush1.bf16.msra.mxu0 %v2530_v53  ;;  %2382 = vmatprep.mubr.msk.bf16.mxu0 %vm1588_vm5, %v3047_v28 }
 0x197   : > { %1753 = vmatprep.subr.bf16.mxu0 %v2581_v33 }
 0x19a   : > { %1754 = vmatpush1.bf16.msra.mxu0 %v2531_v54 }
 0x19b   : > { %1755 = vmatprep.subr.bf16.mxu0 %v2581_v33 }
 0x19d   : > { %1654 = vmatmul.mubr.bf16.gmra.mxu0 %v2542_v20 }
 0x19e   : > { %1756 = vmatpush1.bf16.msra.mxu0 %v2532_v56  ;;  %2383 = vmatprep.mubr.msk.bf16.mxu0 %vm1588_vm5, %v2543_v0 }
 0x19f   : > { %1757 = vmatprep.subr.bf16.mxu0 %v2581_v33 }
 0x1a2   : > { %1758 = vmatpush1.bf16.msra.mxu0 %v2533_v25 }
 0x1a3   : > { %1759 = vmatprep.subr.bf16.mxu0 %v2581_v33 }
 0x1a5   : > { %1664 = vmatmul.mubr.bf16.gmra.mxu0 %v2545_v23 }
 0x1a6   : > { %1760 = vmatpush1.bf16.msra.mxu0 %v2534_v57  ;;  %2388 = vmatprep.mubr.msk.bf16.mxu0 %vm1588_vm5, %v2799_v30 }
 0x1a7   : > { %1761 = vmatprep.subr.bf16.mxu0 %v2581_v33 }
 0x1aa   : > { %1762 = vmatpush1.bf16.msra.mxu0 %v2535_v27 }
 0x1ab   : > { %1777 = vmatprep.subr.bf16.mxu0 %v2581_v33 }
 0x1ae   : > { %1778 = vmatpush2.bf16.msra.mxu0 %v2539_v29 }
 0x1b1   : > { %1780 = vmatmul.mubr.bf16.vlgmr.msra.gmra.mxu0 %v3012_v47 }
 0x1b2   : > { %2389 = vmatprep.mubr.msk.bf16.mxu0 %vm1588_vm5, %v3007_v50 }
 0x1b9   : > { %1788 = vmatmul.mubr.bf16.gmra.mxu0 %v3040_v3 }
 0x1ba   : > { %2390 = vmatprep.mubr.msk.bf16.mxu0 %vm1588_vm5, %v3047_v28 }
 0x1c1   : > { %1796 = vmatmul.mubr.bf16.gmra.mxu0 %v2542_v20 }
 0x1c2   : > { %2391 = vmatprep.mubr.msk.bf16.mxu0 %vm1588_vm5, %v2543_v0 }
 0x1c9   : > { %1804 = vmatmul.mubr.bf16.gmra.mxu0 %v2545_v23 }
 0x1ca   : > { %2116 = vmatprep.mubr.bf16.mxu0 %v2581_v33 }
 0x1d3   : > { %v1899_v30 = vpop.xlane.xlu1 %1898  ;;  %v1893_v36 = vpop.xlane.xlu0 %1892 }
 0x1d4   : > { %v1901_v17 = vmul.f32 0.00390625, %v1899_v30  ;;  %v1900_v9 = vmul.f32 0.00390625, %v1893_v36 }
 0x1d6   : > { %v1902_v10 = vpack.c.bf16 %v1901_v17, %v1900_v9 }
 0x1d7   : > { %v3111_v39 = vpop.permute.xlu1 %1914 }
 0x1d8   : > { %2467 = vmatpush3.bf16.msra.mxu1 %v1902_v10 }
 0x1d9   : > { %2472 = vmatprep.subr.bf16.mxu1 %v3014_v49 }
 0x1db   : > { %2469 = vmatmul.mubr.msk.bf16.vlgmr.msra.gmra.mxu1 %vm1588_vm5, %v2546_v21  ;;  %v3113_v41 = vpop.permute.xlu1 %1310  ;;  %v3127_v46 = vpop.permute.xlu0 %1909 }
 0x1dc   : > { %2474 = vmatprep.mubr.msk.bf16.mxu1 %vm2582_vm12, %v3014_v49 }
 0x1df   : > { %v3115_v43 = vpop.permute.xlu1 %1315  ;;  %v3131_v61 = vpop.permute.xlu0 %1280 }
 0x1e3   : > { %v3119_v42 = vpop.permute.xlu1 %1300 }
 0x1e7   : > { %v3123_v13 = vpop.permute.xlu1 %1305 }
 0x1eb   : > { %v3125_v58 = vpop.permute.xlu1 %1290 }
 0x1ef   : > { %v3129_v59 = vpop.permute.xlu1 %1295 }
 0x1f3   : > { %v3138_v3 = vpop.permute.xlu1 %1285 }
 0x235   : > { %v3117_v37 = vpop.f32.mrf.mxu1 }
 0x237   : > { %v1710_v40 = vpop.f32.mrf.mxu1 }
 0x238   : > { %v3142_v6 = vadd.f32 %v1710_v40, %v3131_v61 }
 0x239   : > { %v3121_v26 = vpop.f32.mrf.mxu1 }
 0x23b   : > { %v1714_v2 = vpop.f32.mrf.mxu1 }
 0x23c   : > { %v1715_v36 = vadd.f32 %v1714_v2, %v3138_v3  ;;  %v1709_v2 = vadd.f32 %v3117_v37, %v3131_v61 }
 0x23d   : > { %v1718_v7 = vpop.f32.mrf.mxu1 }
 0x23e   : > { %v1719_v27 = vadd.f32 %v1718_v7, %v3125_v58 }
 0x23f   : > { %v1720_v15 = vpop.f32.mrf.mxu1 }
 0x240   : > { %v1721_v4 = vadd.f32 %v1720_v15, %v3125_v58 }
 0x241   : > { %v1722_v50 = vpop.f32.mrf.mxu1 }
 0x242   : > { %v1723_v29 = vadd.f32 %v1722_v50, %v3129_v59  ;;  %v1825_v30 = vmax.f32 %v1721_v4, 0.0  ;;  %v1820_v4 = vmax.f32 %v1715_v36, 0.0 }
 0x243   : > { %v1724_v34 = vpop.f32.mrf.mxu1 }
 0x244   : > { %v1725_v45 = vadd.f32 %v1724_v34, %v3129_v59 }
 0x245   : > { %v1728_v38 = vpop.f32.mrf.mxu1 }
 0x246   : > { %v1729_v28 = vadd.f32 %v1728_v38, %v3119_v42  ;;  %v1830_v10 = vmax.f32 %v1725_v45, 0.0 }
 0x247   : > { %v1730_v47 = vpop.f32.mrf.mxu1 }
 0x248   : > { %v1731_v22 = vadd.f32 %v1730_v47, %v3119_v42  ;;  %v1834_v15 = vmax.f32 %v1729_v28, 0.0  ;;  %v1860_v28 = vpack.c.bf16 %v1830_v10, %v1825_v30 }
 0x249   : > { %v1732_v51 = vpop.f32.mrf.mxu1 }
 0x24a   : > { %v1733_v44 = vadd.f32 %v1732_v51, %v3123_v13  ;;  %v1835_v16 = vmax.f32 %v1731_v22, 0.0 }
 0x24b   : > { %v1734_v60 = vpop.f32.mrf.mxu1 }
 0x24c   : > { %v1735_v35 = vadd.f32 %v1734_v60, %v3123_v13  ;;  %v1839_v38 = vmax.f32 %v1733_v44, 0.0 }
 0x24d   : > { %v1635_v62 = vpop.f32.mrf.mxu0  ;;  %v1738_v63 = vpop.f32.mrf.mxu1 }
 0x24e   : > { %v1739_v14 = vadd.f32 %v1738_v63, %v3113_v41  ;;  %v1636_v24 = vadd.f32 %v1635_v62, %v3131_v61  ;;  %v1840_v18 = vmax.f32 %v1735_v35, 0.0  ;;  %v1713_v35 = vadd.f32 %v3121_v26, %v3138_v3 }
 0x24f   : > { %v1637_v12 = vpop.f32.mrf.mxu0  ;;  %v1740_v32 = vpop.f32.mrf.mxu1 }
 0x250   : > { %v1741_v1 = vadd.f32 %v1740_v32, %v3113_v41  ;;  %v1638_v11 = vadd.f32 %v1637_v12, %v3131_v61  ;;  %v1844_v19 = vmax.f32 %v1739_v14, 0.0  ;;  %v1812_v55 = vmax.f32 %v1636_v24, 0.0 }
 0x251   : > { %v1639_v8 = vpop.f32.mrf.mxu0  ;;  %v1742_v52 = vpop.f32.mrf.mxu1  ;;  %v1865_v60 = vpack.c.bf16 %v1840_v18, %v1835_v16  ;;  %v1815_v12 = vmax.f32 %v3142_v6, 0.0  ;;  %v1824_v32 = vmax.f32 %v1719_v27, 0.0  ;;  %v1829_v24 = vmax.f32 %v1723_v29, 0.0 }
 0x252   : > { %v1743_v31 = vadd.f32 %v1742_v52, %v3115_v43  ;;  %v1640_v20 = vadd.f32 %v1639_v8, %v3138_v3  ;;  %v1845_v5 = vmax.f32 %v1741_v1, 0.0  ;;  %v1813_v48 = vmax.f32 %v1638_v11, 0.0 }
 0x253   : > { %v1641_v0 = vpop.f32.mrf.mxu0  ;;  %v1744_v23 = vpop.f32.mrf.mxu1  ;;  %v1864_v1 = vpack.c.bf16 %v1839_v38, %v1834_v15  ;;  %v1819_v6 = vmax.f32 %v1713_v35, 0.0  ;;  %v1814_v16 = vmax.f32 %v1709_v2, 0.0  ;;  %v1859_v18 = vpack.c.bf16 %v1829_v24, %v1824_v32 }
 0x254   : > { %v1849_v53 = vmax.f32 %v1743_v31, 0.0  ;;  %v1745_v54 = vadd.f32 %v1744_v23, %v3115_v43  ;;  %v1817_v56 = vmax.f32 %v1640_v20, 0.0  ;;  %v1642_v25 = vadd.f32 %v1641_v0, %v3138_v3 }
 0x255   : > { %v1645_v57 = vpop.f32.mrf.mxu0  ;;  %v1855_v20 = vpack.c.bf16 %v1820_v4, %v1815_v12 }
 0x256   : > { %v1850_v17 = vmax.f32 %v1745_v54, 0.0  ;;  %v1646_v9 = vadd.f32 %v1645_v57, %v3125_v58  ;;  %v1818_v21 = vmax.f32 %v1642_v25, 0.0  ;;  %v1869_v34 = vpack.c.bf16 %v1849_v53, %v1844_v19  ;;  %v3177_v57 = vld [vmem:[%s3246_s2] sm:$0xff]  }
 0x257   : > { %v1647_v40 = vpop.f32.mrf.mxu0  ;;  %v3156_v47 = vpack.c.bf16 %v1817_v56, %v1812_v55 }
 0x258   : > { %v1870_v51 = vpack.c.bf16 %v1850_v17, %v1845_v5  ;;  %v1648_v7 = vadd.f32 %v1647_v40, %v3125_v58  ;;  %v3159_v62 = vpack.c.bf16 %v1818_v21, %v1813_v48  ;;  %v1822_v63 = vmax.f32 %v1646_v9, 0.0 }
 0x259   : > { %v1649_v50 = vpop.f32.mrf.mxu0  ;;  %v1854_v48 = vpack.c.bf16 %v1819_v6, %v1814_v16 }
 0x25a   : > { %2092 = vmatprep.subr.bf16.mxu0 %v1870_v51  ;;  %v1650_v22 = vadd.f32 %v1649_v50, %v3129_v59  ;;  %v1823_v52 = vmax.f32 %v1648_v7, 0.0 }
 0x25b   : > { %v1651_v14 = vpop.f32.mrf.mxu0  ;;  %2093 = vmatpush1.bf16.msra.mxu0 %v1869_v34 }
 0x25c   : > { %v1827_v8 = vmax.f32 %v1650_v22, 0.0  ;;  %2094 = vmatprep.subr.bf16.mxu0 %v1865_v60  ;;  %v1652_v37 = vadd.f32 %v1651_v14, %v3129_v59 }
 0x25d   : > { %v1655_v44 = vpop.f32.mrf.mxu0 }
 0x25e   : > { %v1656_v45 = vadd.f32 %v1655_v44, %v3119_v42  ;;  %v1828_v11 = vmax.f32 %v1652_v37, 0.0  ;;  %v3169_v31 = vpack.c.bf16 %v1827_v8, %v1822_v63 }
 0x25f   : > { %v1657_v26 = vpop.f32.mrf.mxu0  ;;  %2095 = vmatpush1.bf16.msra.mxu0 %v1864_v1 }
 0x260   : > { %2096 = vmatprep.subr.bf16.mxu0 %v1860_v28  ;;  %v3171_v0 = vpack.c.bf16 %v1828_v11, %v1823_v52  ;;  %v1832_v5 = vmax.f32 %v1656_v45, 0.0  ;;  %v1658_v11 = vadd.f32 %v1657_v26, %v3119_v42 }
 0x261   : > { %v1659_v19 = vpop.f32.mrf.mxu0 }
 0x262   : > { %v1660_v23 = vadd.f32 %v1659_v19, %v3123_v13 }
 0x263   : > { %v1661_v55 = vpop.f32.mrf.mxu0  ;;  %2097 = vmatpush1.bf16.msra.mxu0 %v1859_v18 }
 0x264   : > { %v1837_v53 = vmax.f32 %v1660_v23, 0.0  ;;  %2098 = vmatprep.subr.bf16.mxu0 %v1855_v20  ;;  %v1662_v6 = vadd.f32 %v1661_v55, %v3123_v13 }
 0x265   : > { %v1665_v54 = vpop.f32.mrf.mxu0 }
 0x266   : > { %v1862_v56 = vpack.c.bf16 %v1837_v53, %v1832_v5  ;;  %v1666_v52 = vadd.f32 %v1665_v54, %v3113_v41  ;;  %v1838_v53 = vmax.f32 %v1662_v6, 0.0  ;;  %v2547_v54 = vld [vmem:[%s3248_s4] sm:$0xff]  }
 0x267   : > { %v1667_v25 = vpop.f32.mrf.mxu0  ;;  %2099 = vmatpush1.bf16.msra.mxu0 %v1854_v48  ;;  %v1833_v48 = vmax.f32 %v1658_v11, 0.0 }
 0x268   : > { %v1668_v32 = vadd.f32 %v1667_v25, %v3113_v41  ;;  %v1842_v5 = vmax.f32 %v1666_v52, 0.0 }
 0x269   : > { %v1669_v27 = vpop.f32.mrf.mxu0  ;;  %v1863_v25 = vpack.c.bf16 %v1838_v53, %v1833_v48 }
 0x26a   : > { %2398 = vmatmul.mubr.msk.bf16.vlgmr.msra.gmra.mxu0 %vm1020_vm4, %v3177_v57  ;;  %v1843_v8 = vmax.f32 %v1668_v32, 0.0  ;;  %v1670_v44 = vadd.f32 %v1669_v27, %v3115_v43 }
 0x26b   : > { %v1671_v29 = vpop.f32.mrf.mxu0 }
 0x26c   : > { %v1847_v23 = vmax.f32 %v1670_v44, 0.0 }
 0x271   : > { %v1781_v30 = vpop.f32.mrf.mxu0 }
 0x272   : > { %v1782_v36 = vadd.f32 %v1781_v30, %v3131_v61 }
 0x273   : > { %v1783_v17 = vpop.f32.mrf.mxu0 }
 0x274   : > { %v1816_v10 = vmax.f32 %v1782_v36, 0.0 }
 0x275   : > { %v1784_v9 = vpop.f32.mrf.mxu0 }
 0x276   : > { %v1785_v21 = vadd.f32 %v1784_v9, %v3138_v3  ;;  %v1672_v3 = vadd.f32 %v1671_v29, %v3115_v43 }
 0x277   : > { %v1786_v40 = vpop.f32.mrf.mxu0 }
 0x278   : > { %v1821_v15 = vmax.f32 %v1785_v21, 0.0  ;;  %v1848_v28 = vmax.f32 %v1672_v3, 0.0 }
 0x279   : > { %v1789_v34 = vpop.f32.mrf.mxu0 }
 0x27a   : > { %v3183_v38 = vpack.c.bf16 %v1821_v15, %v1816_v10  ;;  %v1868_v19 = vpack.c.bf16 %v1848_v28, %v1843_v8 }
 0x27b   : > { %v1791_v51 = vpop.f32.mrf.mxu0 }
 0x27d   : > { %v1792_v60 = vpop.f32.mrf.mxu0 }
 0x27f   : > { %v1794_v7 = vpop.f32.mrf.mxu0 }
 0x281   : > { %v1797_v50 = vpop.f32.mrf.mxu0 }
 0x282   : > { %v1798_v27 = vadd.f32 %v1797_v50, %v3119_v42 }
 0x283   : > { %v1799_v2 = vpop.f32.mrf.mxu0 }
 0x285   : > { %v1800_v63 = vpop.f32.mrf.mxu0 }
 0x286   : > { %v1801_v29 = vadd.f32 %v1800_v63, %v3123_v13 }
 0x287   : > { %v1802_v22 = vpop.f32.mrf.mxu0 }
 0x289   : > { %v1805_v35 = vpop.f32.mrf.mxu0 }
 0x28a   : > { %v1806_v26 = vadd.f32 %v1805_v35, %v3113_v41  ;;  %v1793_v41 = vadd.f32 %v1792_v60, %v3129_v59 }
 0x28b   : > { %v1807_v12 = vpop.f32.mrf.mxu0 }
 0x28c   : > { %v1846_v30 = vmax.f32 %v1806_v26, 0.0  ;;  %v1831_v13 = vmax.f32 %v1793_v41, 0.0 }
 0x28d   : > { %v1808_v61 = vpop.f32.mrf.mxu0 }
 0x28e   : > { %v1809_v55 = vadd.f32 %v1808_v61, %v3115_v43  ;;  %v1841_v43 = vmax.f32 %v1801_v29, 0.0 }
 0x28f   : > { %v1810_v14 = vpop.f32.mrf.mxu0 }
 0x290   : > { %v1851_v36 = vmax.f32 %v1809_v55, 0.0 }
 0x29b   : > { %v1959_v24 = vpop.f32.mrf.mxu1 }
 0x29c   : > { %v1960_v4 = vadd.f32 %v1959_v24, %v3127_v46 }
 0x29d   : > { %v2470_v1 = vpop.f32.mrf.mxu1 }
 0x29e   : > { %v1966_v18 = vmax.f32 %v1960_v4, 0.0 }
 0x29f   : > { %v1962_v37 = vpop.f32.mrf.mxu1 }
 0x2a0   : > { %v1963_v45 = vadd.f32 %v1962_v37, %v3111_v39  ;;  %v1867_v39 = vpack.c.bf16 %v1847_v23, %v1842_v5 }
 0x2a1   : > { %v2471_v16 = vpop.f32.mrf.mxu1 }
 0x2a2   : > { %v1967_v20 = vmax.f32 %v1963_v45, 0.0 }
 0x2a4   : > { %v1970_v46 = vpack.c.bf16 %v1967_v20, %v1966_v18 }
 0x2a6   : > { %2473 = vmatpush3.bf16.msra.mxu1 %v1970_v46 }
 0x2a7   : > { %2049 = vmatprep.subr.bf16.mxu1 %v1868_v19 }
 0x2a9   : > { %2475 = vmatmul.mubr.msk.bf16.vlgmr.msra.gmra.mxu1 %vm1588_vm5, %v2547_v54 }
 0x2aa   : > { %2050 = vmatpush1.bf16.msra.mxu1 %v1867_v39  ;;  %2073 = vmatprep.mubr.bf16.mxu1 %v2581_v33  ;;  %v1790_v33 = vadd.f32 %v1789_v34, %v3125_v58 }
 0x2ab   : > { %2051 = vmatprep.subr.bf16.mxu1 %v1863_v25 }
 0x2ac   : > { %v1826_v42 = vmax.f32 %v1790_v33, 0.0 }
 0x2ae   : > { %2052 = vmatpush1.bf16.msra.mxu1 %v1862_v56  ;;  %v1871_v56 = vpack.c.bf16 %v1851_v36, %v1846_v30  ;;  %v1861_v58 = vpack.c.bf16 %v1831_v13, %v1826_v42 }
 0x2af   : > { %2053 = vmatprep.subr.bf16.mxu1 %v3171_v0  ;;  %v1836_v0 = vmax.f32 %v1798_v27, 0.0 }
 0x2b2   : > { %2054 = vmatpush1.bf16.msra.mxu1 %v3169_v31  ;;  %v2168_v31 = vld [vmem:[%s3249_s5 + $0x50] sm:$0xff] }
 0x2b3   : > { %2055 = vmatprep.subr.bf16.mxu1 %v3159_v62 }
 0x2b6   : > { %2056 = vmatpush1.bf16.msra.mxu1 %v3156_v47  ;;  %v1866_v47 = vpack.c.bf16 %v1841_v43, %v1836_v0 }
 0x2b7   : > { %2478 = vmatprep.subr.bf16.mxu1 %v3014_v49 }
 0x2b9   : > { %2397 = vmatmul.mubr.msk.bf16.vlgmr.msra.gmra.mxu1 %vm1020_vm4, %v3177_v57 }
 0x2ba   : > { %2479 = vmatpush3.bf16.msra.mxu1 %v1871_v56  ;;  %2486 = vmatprep.mubr.msk.bf16.mxu1 %vm2582_vm12, %v3014_v49 }
 0x2bb   : > { %2480 = vmatprep.subr.bf16.mxu1 %v3014_v49 }
 0x2be   : > { %2481 = vmatpush3.bf16.msra.mxu1 %v1866_v47 }
 0x2bf   : > { %2482 = vmatprep.subr.bf16.mxu1 %v3014_v49 }
 0x2c2   : > { %2483 = vmatpush3.bf16.msra.mxu1 %v1861_v58 }
 0x2c3   : > { %2484 = vmatprep.subr.bf16.mxu1 %v3014_v49  ;;  %v2169_v49 = vld [vmem:[%s3249_s5 + $0x58] sm:$0xff] }
 0x2c6   : > { %2485 = vmatpush3.bf16.msra.mxu1 %v3183_v38 }
 0x2c9   : > { %2487 = vmatmul.mubr.msk.bf16.vlgmr.msra.gmra.mxu1 %vm1020_vm4, %v3177_v57 }
 0x32a   : > { %v2118_v60 = vpop.f32.mrf.mxu0 }
 0x32c   : > { %v2120_v7 = vpop.f32.mrf.mxu0 }
 0x32e   : > { %v2122_v50 = vpop.f32.mrf.mxu0 }
 0x330   : > { %v2124_v63 = vpop.f32.mrf.mxu0 }
 0x369   : > { %v2013_v59 = vpop.f32.mrf.mxu1 }
 0x36a   : > { %2024 = vperm.xlu0 %2523, %v2013_v59  }
 0x36b   : > { %v2476_v62 = vpop.f32.mrf.mxu1 }
 0x36d   : > { %v2016_v17 = vpop.f32.mrf.mxu1 }
 0x36e   : > { %2172 = vperm.xlu0 %2523, %v2168_v31   ;;  %2029 = vperm.xlu1 %2524, %v2016_v17  }
 0x36f   : > { %v2477_v9 = vpop.f32.mrf.mxu1 }
 0x372   : > { %2177 = vperm.xlu1 %2524, %v2169_v49  }
 0x379   : > { %v2075_v10 = vpop.f32.mrf.mxu1 }
 0x37b   : > { %v2077_v21 = vpop.f32.mrf.mxu1 }
 0x37d   : > { %v2079_v57 = vpop.f32.mrf.mxu1 }
 0x37f   : > { %v2081_v40 = vpop.f32.mrf.mxu1 }
 0x389   : > { %v2161_v15 = vpop.f32.mrf.mxu1 }
 0x38b   : > { %v2488_v34 = vpop.f32.mrf.mxu1 }
 0x38d   : > { %v2164_v38 = vpop.f32.mrf.mxu1 }
 0x38f   : > { %v2489_v51 = vpop.f32.mrf.mxu1 }
 0x3e5   : > { %v2025_v2 = vpop.permute.xlu0 %2024 }
 0x3e6   : > { %v2076_v22 = vadd.f32 %v2075_v10, %v2025_v2  ;;  %v2078_v35 = vadd.f32 %v2077_v21, %v2025_v2  ;;  %v2119_v61 = vadd.f32 %v2118_v60, %v2025_v2  ;;  %v2121_v14 = vadd.f32 %v2120_v7, %v2025_v2 }
 0x3e7   : > { %v2162_v32 = vadd.f32 %v2161_v15, %v2025_v2 }
 0x3e9   : > { %v2030_v12 = vpop.permute.xlu1 %2029  ;;  %v2173_v3 = vpop.permute.xlu0 %2172 }
 0x3ea   : > { %v2125_v24 = vadd.f32 %v2124_v63, %v2030_v12  ;;  %v2180_v1 = vadd.f32 %v2173_v3, %v2076_v22  ;;  %v2181_v4 = vadd.f32 %v2173_v3, %v2078_v35  ;;  %v2182_v8 = vadd.f32 %v2173_v3, %v2119_v61 }
 0x3eb   : > { %v2183_v28 = vadd.f32 %v2173_v3, %v2121_v14  ;;  %v2184_v37 = vadd.f32 %v2173_v3, %v2162_v32  ;;  %v2080_v52 = vadd.f32 %v2079_v57, %v2030_v12  ;;  %v2082_v11 = vadd.f32 %v2081_v40, %v2030_v12 }
 0x3ec   : > { %v2190_v44 = vmax.f32 %v2180_v1, 0.0  ;;  %v2191_v45 = vmax.f32 %v2181_v4, 0.0  ;;  %v2123_v6 = vadd.f32 %v2122_v50, %v2030_v12  ;;  %v2165_v16 = vadd.f32 %v2164_v38, %v2030_v12 }
 0x3ed   : > { %v2192_v18 = vmax.f32 %v2182_v8, 0.0  ;;  %v2193_v20 = vmax.f32 %v2183_v28, 0.0  ;;  %v2194_v19 = vmax.f32 %v2184_v37, 0.0  ;;  %v2178_v5 = vpop.permute.xlu1 %2177 }
 0x3ee   : > { %2200 = vst [vmem:[%s3229_s8] sm:$0xff] %v2190_v44  ;;  %2201 = vst [vmem:[%s3229_s8 + $0x8] sm:$0xff] %v2191_v45  ;;  %v2185_v23 = vadd.f32 %v2178_v5, %v2080_v52  ;;  %v2186_v46 = vadd.f32 %v2178_v5, %v2082_v11  ;;  %v2187_v48 = vadd.f32 %v2178_v5, %v2123_v6 }
 0x3ef   : > { %v2188_v53 = vadd.f32 %v2178_v5, %v2125_v24  ;;  %2202 = vst [vmem:[%s3229_s8 + $0x10] sm:$0xff] %v2192_v18  ;;  %2203 = vst [vmem:[%s3229_s8 + $0x18] sm:$0xff] %v2193_v20  ;;  %v2189_v54 = vadd.f32 %v2178_v5, %v2165_v16 }
 0x3f0   : > { %2204 = vst [vmem:[%s3229_s8 + $0x20] sm:$0xff] %v2194_v19  ;;  %v2195_v39 = vmax.f32 %v2185_v23, 0.0  ;;  %v2196_v25 = vmax.f32 %v2186_v46, 0.0  ;;  %v2197_v26 = vmax.f32 %v2187_v48, 0.0 }
 0x3f1   : > { %v2198_v55 = vmax.f32 %v2188_v53, 0.0  ;;  %v2199_v27 = vmax.f32 %v2189_v54, 0.0 }
 0x3f2   : > { %2205 = vst [vmem:[%s3229_s8 + $0x28] sm:$0xff] %v2195_v39  ;;  %2206 = vst [vmem:[%s3229_s8 + $0x30] sm:$0xff] %v2196_v25 }
 0x3f3   : > { %2207 = vst [vmem:[%s3229_s8 + $0x38] sm:$0xff] %v2197_v26  ;;  %2208 = vst [vmem:[%s3229_s8 + $0x40] sm:$0xff] %v2198_v55 }
 0x3f4   : > { %2209 = vst [vmem:[%s3229_s8 + $0x48] sm:$0xff] %v2199_v27 }
 0x3f5 PF: > { %s16_s21 = sadd.s32 1, %s2556_s21  }
 0x3f6   : > { %p13_p4 = scmp.ge.s32.totalorder %s16_s21, 4  }
 0x3f8   :  { %15 = sbr.rel (!%p13_p4) target bundleno = 1 (0x1), region = 74 }

</bundles_post_ra>
